<compile_context>
chip_gen: v7x
topology: tpu7x:2x2x1
jax: 0.10.0
libtpu: 0.0.40
codegen_flags: <defaults>
</compile_context>

<pallas_src>
import functools
import math

import jax
import jax.numpy as jnp
from jax import lax
from jax.experimental import pallas as pl
from jax.experimental.pallas import tpu as pltpu

CORRE_DIM = 64          # fixed by the module (self.corre_dim = 64)
CORRE_OUT_DIM = 64      # default corre_out_dim
BN_EPS = 1e-5
_PACK_ROWS = 8          # packed similarity rows per chunk (=> 16 original rows/chunk)
_MAX_TILE_ROWS = 256    # default batch-tile cap: well inside v5e's 16 MiB scoped VMEM


def _pooled_linear(text, image, w):
    """pooled[b,i] = max_j softmax(s[b,i]*image[b,:])[j]; returns pooled @ w (no bias).

    Hot path is lane-dense: image is duplicated along lanes to 128 wide, and each
    packed row carries two original similarity rows (i and i + 32), so exp / mul /
    sub run on full 128-lane vregs instead of half-empty 64-lane ones.
    """
    B, D = text.shape
    H = D // 2
    CH = _PACK_ROWS
    assert D % 2 == 0 and H % CH == 0

    s = text * (1.0 / math.sqrt(D))                         # fold similarity scale
    img_max = jnp.max(image, axis=-1, keepdims=True)        # (B,1)
    img_min = jnp.min(image, axis=-1, keepdims=True)        # (B,1)
    m = s * jnp.where(s >= 0.0, img_max, img_min)           # analytic row max, 1 mul

    img2 = jnp.concatenate([image, image], axis=-1)[:, None, :]   # (B,1,2D) lane-dense
    lane = lax.broadcasted_iota(jnp.int32, (1, 1, 2 * D), 2)
    upper = lane >= D                                              # hoisted half-lane mask

    d_lo_parts, d_hi_parts = [], []
    # Statically unrolled chunks of 8 packed rows (16 original rows) so only one
    # (B, 8, 128) exp slab is logically live per step.  NOTE: a Python `for`
    # does not bound live ranges; real footprint control at large B is the
    # batch-tiled grid in the wrapper.
    for c in range(H // CH):
        lo = c * CH
        sl, sh = s[:, lo:lo + CH], s[:, H + lo:H + lo + CH]        # rows p and p+32
        ml, mh = m[:, lo:lo + CH], m[:, H + lo:H + lo + CH]
        sp = jnp.concatenate(
            [jnp.broadcast_to(sl[:, :, None], (B, CH, D)),
             jnp.broadcast_to(sh[:, :, None], (B, CH, D))], axis=-1)   # (B,CH,2D)
        mp = jnp.concatenate(
            [jnp.broadcast_to(ml[:, :, None], (B, CH, D)),
             jnp.broadcast_to(mh[:, :, None], (B, CH, D))], axis=-1)
        e = jnp.exp(sp * img2 - mp)                                     # (B,CH,2D) <= 1
        d_all = jnp.sum(e, axis=-1)                                     # lo + hi sums
        d_hi = jnp.sum(jnp.where(upper, e, 0.0), axis=-1)               # hi sums
        d_lo_parts.append(d_all - d_hi)
        d_hi_parts.append(d_hi)

    # lo-parts cover rows 0..H-1 in order, hi-parts cover rows H..D-1 in order.
    denom = jnp.concatenate(d_lo_parts + d_hi_parts, axis=-1)           # (B,D)
    # ONE full-width exact reciprocal (feeds the Linear at 1e-4 tolerance) ...
    pooled = pl.reciprocal(denom, approx=False)
    # ... and ONE MXU matmul instead of four 16-wide partial dots.
    return jnp.dot(pooled, w, preferred_element_type=jnp.float32)       # (B,out)


def _fused_kernel(text_ref, image_ref, w_ref, gamma_ref, beta_ref, out_ref):
    """Whole forward in one kernel (batch fits in one tile): pool + Linear + BN + ReLU."""
    y = _pooled_linear(text_ref[...].astype(jnp.float32),
                       image_ref[...].astype(jnp.float32), w_ref[...])
    # Training-mode BatchNorm1d (biased batch stats); Linear bias cancelled by mean sub.
    mean = jnp.mean(y, axis=0, keepdims=True)
    centered = y - mean
    var = jnp.mean(centered * centered, axis=0, keepdims=True)
    y_bn = centered * lax.rsqrt(var + BN_EPS) * gamma_ref[...] + beta_ref[...]
    out_ref[...] = jnp.maximum(y_bn, 0.0).astype(out_ref.dtype)


def _pool_linear_stats_kernel(text_ref, image_ref, w_ref, y_ref, stats_ref):
    """Pass 1 (batch-tiled, 'parallel'): per-tile y = pooled @ W plus partial BN stats."""
    y = _pooled_linear(text_ref[...].astype(jnp.float32),
                       image_ref[...].astype(jnp.float32), w_ref[...])
    y_ref[...] = y
    sum_y = jnp.sum(y, axis=0, keepdims=True)            # (1,out)
    sumsq_y = jnp.sum(y * y, axis=0, keepdims=True)      # (1,out)
    stats_ref[...] = jnp.concatenate([sum_y, sumsq_y], axis=0)[None, :, :]   # (1,2,out)


def _bn_relu_kernel(y_ref, stats_ref, gamma_ref, beta_ref, out_ref):
    """Pass 2 (batch-tiled, 'parallel'): full-batch mean/var from partials, affine + ReLU."""
    stats = stats_ref[...]                               # (T, 2, out)
    n = stats.shape[0] * y_ref.shape[0]                  # full batch size (static)
    totals = jnp.sum(stats, axis=0)                      # (2, out)
    mean = totals[0:1, :] * (1.0 / n)
    ex2 = totals[1:2, :] * (1.0 / n)
    var = ex2 - mean * mean                              # biased batch variance
    inv = lax.rsqrt(var + BN_EPS)
    y_bn = (y_ref[...] - mean) * inv * gamma_ref[...] + beta_ref[...]
    out_ref[...] = jnp.maximum(y_bn, 0.0).astype(out_ref.dtype)


def prepare_params(w, b, gamma, beta):
    """One-time parameter massaging, hoisted out of the per-call path.

    The Linear bias `b` is intentionally dropped: training-mode BatchNorm mean
    subtraction cancels a constant bias exactly.
    """
    del b
    out_dim = w.shape[0]
    return (w.T.astype(jnp.float32),                     # (in, out)
            gamma.reshape(1, out_dim).astype(jnp.float32),
            beta.reshape(1, out_dim).astype(jnp.float32))


def _pick_batch_tile(batch, max_tile_rows):
    """Largest multiple-of-8 batch tile dividing `batch`, capped at max_tile_rows."""
    if batch <= max_tile_rows:
        return batch, 1
    t = (max_tile_rows // 8) * 8
    while t >= 8:
        if batch % t == 0:
            return t, batch // t
        t -= 8
    # TODO(synk): pad + mask the batch (and the BN count) for awkward batch sizes;
    # fall back to a single monolithic tile for now.
    return batch, 1


@functools.partial(jax.jit, static_argnames=("max_tile_rows",))
def cross_modal_forward(text, image, w_t, gamma, beta, *, max_tile_rows=_MAX_TILE_ROWS):
    """text, image: (B, 64); w_t: pre-transposed Linear weight (in, out)."""
    B, D = text.shape
    out_dim = w_t.shape[1]
    bt, num_tiles = _pick_batch_tile(B, max_tile_rows)

    if num_tiles == 1:
        # Small batch: launch/DMA overhead dominates -> one fused kernel, no grid.
        vmem = pl.BlockSpec(memory_space=pltpu.MemorySpace.VMEM)
        return pl.pallas_call(
            _fused_kernel,
            out_shape=jax.ShapeDtypeStruct((B, out_dim), jnp.float32),
            in_specs=[vmem] * 5,
            out_specs=vmem,
        )(text, image, w_t, gamma, beta)

    # Large batch: "parallel" batch-tiled grid (v7x megacore + bounded VMEM) with
    # a two-pass BatchNorm so statistics span the FULL batch.
    # (out_dim=64 < 128 keeps stores masked; padding the output to 128 lanes would
    #  change the module's output contract, so it is not done here.)
    y, stats = pl.pallas_call(
        _pool_linear_stats_kernel,
        out_shape=(jax.ShapeDtypeStruct((B, out_dim), jnp.float32),
                   jax.ShapeDtypeStruct((num_tiles, 2, out_dim), jnp.float32)),
        grid=(num_tiles,),
        in_specs=[pl.BlockSpec((bt, D), lambda i: (i, 0)),
                  pl.BlockSpec((bt, D), lambda i: (i, 0)),
                  pl.BlockSpec((D, out_dim), lambda i: (0, 0))],
        out_specs=(pl.BlockSpec((bt, out_dim), lambda i: (i, 0)),
                   pl.BlockSpec((1, 2, out_dim), lambda i: (i, 0, 0))),
        compiler_params=pltpu.CompilerParams(
            dimension_semantics=("parallel",),
            vmem_limit_bytes=32 * 1024 * 1024),
    )(text, image, w_t)

    return pl.pallas_call(
        _bn_relu_kernel,
        out_shape=jax.ShapeDtypeStruct((B, out_dim), jnp.float32),
        grid=(num_tiles,),
        in_specs=[pl.BlockSpec((bt, out_dim), lambda i: (i, 0)),
                  pl.BlockSpec((num_tiles, 2, out_dim), lambda i: (0, 0, 0)),
                  pl.BlockSpec((1, out_dim), lambda i: (0, 0)),
                  pl.BlockSpec((1, out_dim), lambda i: (0, 0))],
        out_specs=pl.BlockSpec((bt, out_dim), lambda i: (i, 0)),
        compiler_params=pltpu.CompilerParams(dimension_semantics=("parallel",)),
    )(y, stats, gamma, beta)


def _reference(text, image, w, b, gamma, beta):
    """Faithful translation of the PyTorch module (full softmax, max-pool,
    Linear WITH bias, training-mode BatchNorm, ReLU)."""
    D = text.shape[1]
    sim = (text[:, :, None] * image[:, None, :]) / math.sqrt(D)
    corr = jax.nn.softmax(sim, axis=-1)
    pooled = jnp.max(corr, axis=-1)
    y = pooled @ w.T + b
    mean = jnp.mean(y, axis=0, keepdims=True)
    var = jnp.mean((y - mean) ** 2, axis=0, keepdims=True)
    y = (y - mean) / jnp.sqrt(var + BN_EPS) * gamma + beta
    return jnp.maximum(y, 0.0)


if __name__ == "__main__":
    key = jax.random.PRNGKey(0)
    k_w, k_b, k_g, k_be, k_t1, k_i1, k_t2, k_i2 = jax.random.split(key, 8)

    # Deterministic parameters (torch Linear-style uniform bounds).
    bound = 1.0 / math.sqrt(CORRE_DIM)
    w = jax.random.uniform(k_w, (CORRE_OUT_DIM, CORRE_DIM),
                           minval=-bound, maxval=bound, dtype=jnp.float32)
    b = jax.random.uniform(k_b, (CORRE_OUT_DIM,),
                           minval=-bound, maxval=bound, dtype=jnp.float32)
    gamma = 1.0 + 0.1 * jax.random.normal(k_g, (CORRE_OUT_DIM,), dtype=jnp.float32)
    beta = 0.1 * jax.random.normal(k_be, (CORRE_OUT_DIM,), dtype=jnp.float32)
    params = prepare_params(w, b, gamma, beta)           # hoisted, done once

    # Path 1: small batch -> single fused kernel (no grid).
    B1 = 8
    text1 = jax.random.normal(k_t1, (B1, CORRE_DIM), dtype=jnp.float32)
    image1 = jax.random.normal(k_i1, (B1, CORRE_DIM), dtype=jnp.float32)
    out1 = jax.block_until_ready(cross_modal_forward(text1, image1, *params))
    ref1 = _reference(text1, image1, w, b, gamma, beta)
    assert out1.shape == (B1, CORRE_OUT_DIM)
    assert jnp.allclose(out1, ref1, atol=1e-4, rtol=1e-4), "fused path mismatch"

    # Path 2: batch-tiled 'parallel' grid + two-pass BatchNorm (small shapes: 64 rows, tile 16).
    B2 = 64
    text2 = jax.random.normal(k_t2, (B2, CORRE_DIM), dtype=jnp.float32)
    image2 = jax.random.normal(k_i2, (B2, CORRE_DIM), dtype=jnp.float32)
    out2 = jax.block_until_ready(
        cross_modal_forward(text2, image2, *params, max_tile_rows=16))
    ref2 = _reference(text2, image2, w, b, gamma, beta)
    assert out2.shape == (B2, CORRE_OUT_DIM)
    assert jnp.allclose(out2, ref2, atol=1e-4, rtol=1e-4), "tiled path mismatch"

    print("KERNEL_OK")
</pallas_src>

<mosaic_0001>
module attributes {stable_mosaic.version = 11 : i64} {
  func.func @_fused_kernel(%arg0: memref<8x64xf32, #tpu.memory_space<vmem>>, %arg1: memref<8x64xf32, #tpu.memory_space<vmem>>, %arg2: memref<64x64xf32, #tpu.memory_space<vmem>>, %arg3: memref<1x64xf32, #tpu.memory_space<vmem>>, %arg4: memref<1x64xf32, #tpu.memory_space<vmem>>, %arg5: memref<8x64xf32, #tpu.memory_space<vmem>>) attributes {dimension_semantics = [], scalar_prefetch = 0 : i64, scratch_operands = 0 : i64, tpu.core_type = #tpu.core_type<tc>} {
    %c0 = arith.constant 0 : index
    %c0_0 = arith.constant 0 : index
    %0 = vector.load %arg0[%c0, %c0_0] : memref<8x64xf32, #tpu.memory_space<vmem>>, vector<8x64xf32>
    %c0_1 = arith.constant 0 : index
    %c0_2 = arith.constant 0 : index
    %1 = vector.load %arg1[%c0_1, %c0_2] : memref<8x64xf32, #tpu.memory_space<vmem>>, vector<8x64xf32>
    %c0_3 = arith.constant 0 : index
    %c0_4 = arith.constant 0 : index
    %2 = vector.load %arg2[%c0_3, %c0_4] : memref<64x64xf32, #tpu.memory_space<vmem>>, vector<64x64xf32>
    %cst = arith.constant 1.250000e-01 : f32
    %3 = vector.broadcast %cst : f32 to vector<8x64xf32>
    %4 = arith.mulf %0, %3 : vector<8x64xf32>
    %cst_5 = arith.constant dense<0xFF800000> : vector<8xf32>
    %5 = vector.multi_reduction <maximumf>, %1, %cst_5 [1] : vector<8x64xf32> to vector<8xf32>
    %6 = vector.shape_cast %5 : vector<8xf32> to vector<8x1xf32>
    %cst_6 = arith.constant dense<0x7F800000> : vector<8xf32>
    %7 = vector.multi_reduction <minimumf>, %1, %cst_6 [1] : vector<8x64xf32> to vector<8xf32>
    %8 = vector.shape_cast %7 : vector<8xf32> to vector<8x1xf32>
    %cst_7 = arith.constant 0.000000e+00 : f32
    %9 = vector.broadcast %cst_7 : f32 to vector<8x64xf32>
    %10 = arith.cmpf oge, %4, %9 : vector<8x64xf32>
    %11 = vector.shape_cast %6 : vector<8x1xf32> to vector<8x1xf32>
    %12 = vector.broadcast %11 : vector<8x1xf32> to vector<8x64xf32>
    %13 = vector.shape_cast %8 : vector<8x1xf32> to vector<8x1xf32>
    %14 = vector.broadcast %13 : vector<8x1xf32> to vector<8x64xf32>
    %15 = arith.select %10, %12, %14 : vector<8x64xi1>, vector<8x64xf32>
    %16 = arith.mulf %4, %15 : vector<8x64xf32>
    %17 = tpu.concatenate %1, %1 in 1 : vector<8x64xf32>, vector<8x64xf32> -> vector<8x128xf32>
    %18 = vector.shape_cast %17 : vector<8x128xf32> to vector<8x1x128xf32>
    %19 = tpu.iota {dimensions = array<i32: 2>} : vector<1x1x128xi32>
    %c64_i32 = arith.constant 64 : i32
    %20 = vector.broadcast %c64_i32 : i32 to vector<1x1x128xi32>
    %21 = arith.cmpi sge, %19, %20 : vector<1x1x128xi32>
    %22 = vector.extract_strided_slice %4 {offsets = [0, 0], sizes = [8, 8], strides = [1, 1]} : vector<8x64xf32> to vector<8x8xf32>
    %23 = vector.extract_strided_slice %4 {offsets = [0, 32], sizes = [8, 8], strides = [1, 1]} : vector<8x64xf32> to vector<8x8xf32>
    %24 = vector.extract_strided_slice %16 {offsets = [0, 0], sizes = [8, 8], strides = [1, 1]} : vector<8x64xf32> to vector<8x8xf32>
    %25 = vector.extract_strided_slice %16 {offsets = [0, 32], sizes = [8, 8], strides = [1, 1]} : vector<8x64xf32> to vector<8x8xf32>
    %26 = vector.shape_cast %22 : vector<8x8xf32> to vector<8x8x1xf32>
    %27 = vector.shape_cast %26 : vector<8x8x1xf32> to vector<8x8x1xf32>
    %28 = vector.broadcast %27 : vector<8x8x1xf32> to vector<8x8x64xf32>
    %29 = vector.shape_cast %23 : vector<8x8xf32> to vector<8x8x1xf32>
    %30 = vector.shape_cast %29 : vector<8x8x1xf32> to vector<8x8x1xf32>
    %31 = vector.broadcast %30 : vector<8x8x1xf32> to vector<8x8x64xf32>
    %32 = tpu.concatenate %28, %31 in 2 : vector<8x8x64xf32>, vector<8x8x64xf32> -> vector<8x8x128xf32>
    %33 = vector.shape_cast %24 : vector<8x8xf32> to vector<8x8x1xf32>
    %34 = vector.shape_cast %33 : vector<8x8x1xf32> to vector<8x8x1xf32>
    %35 = vector.broadcast %34 : vector<8x8x1xf32> to vector<8x8x64xf32>
    %36 = vector.shape_cast %25 : vector<8x8xf32> to vector<8x8x1xf32>
    %37 = vector.shape_cast %36 : vector<8x8x1xf32> to vector<8x8x1xf32>
    %38 = vector.broadcast %37 : vector<8x8x1xf32> to vector<8x8x64xf32>
    %39 = tpu.concatenate %35, %38 in 2 : vector<8x8x64xf32>, vector<8x8x64xf32> -> vector<8x8x128xf32>
    %40 = vector.broadcast %18 : vector<8x1x128xf32> to vector<8x8x128xf32>
    %41 = arith.mulf %32, %40 : vector<8x8x128xf32>
    %42 = arith.subf %41, %39 : vector<8x8x128xf32>
    %43 = math.exp %42 : vector<8x8x128xf32>
    %cst_8 = arith.constant dense<0.000000e+00> : vector<8x8xf32>
    %44 = vector.multi_reduction <add>, %43, %cst_8 [2] : vector<8x8x128xf32> to vector<8x8xf32>
    %cst_9 = arith.constant 0.000000e+00 : f32
    %45 = vector.shape_cast %21 : vector<1x1x128xi1> to vector<1x1x128xi1>
    %46 = vector.broadcast %45 : vector<1x1x128xi1> to vector<8x8x128xi1>
    %47 = vector.broadcast %cst_9 : f32 to vector<8x8x128xf32>
    %48 = arith.select %46, %43, %47 : vector<8x8x128xi1>, vector<8x8x128xf32>
    %cst_10 = arith.constant dense<0.000000e+00> : vector<8x8xf32>
    %49 = vector.multi_reduction <add>, %48, %cst_10 [2] : vector<8x8x128xf32> to vector<8x8xf32>
    %50 = arith.subf %44, %49 : vector<8x8xf32>
    %51 = vector.extract_strided_slice %4 {offsets = [0, 8], sizes = [8, 8], strides = [1, 1]} : vector<8x64xf32> to vector<8x8xf32>
    %52 = vector.extract_strided_slice %4 {offsets = [0, 40], sizes = [8, 8], strides = [1, 1]} : vector<8x64xf32> to vector<8x8xf32>
    %53 = vector.extract_strided_slice %16 {offsets = [0, 8], sizes = [8, 8], strides = [1, 1]} : vector<8x64xf32> to vector<8x8xf32>
    %54 = vector.extract_strided_slice %16 {offsets = [0, 40], sizes = [8, 8], strides = [1, 1]} : vector<8x64xf32> to vector<8x8xf32>
    %55 = vector.shape_cast %51 : vector<8x8xf32> to vector<8x8x1xf32>
    %56 = vector.shape_cast %55 : vector<8x8x1xf32> to vector<8x8x1xf32>
    %57 = vector.broadcast %56 : vector<8x8x1xf32> to vector<8x8x64xf32>
    %58 = vector.shape_cast %52 : vector<8x8xf32> to vector<8x8x1xf32>
    %59 = vector.shape_cast %58 : vector<8x8x1xf32> to vector<8x8x1xf32>
    %60 = vector.broadcast %59 : vector<8x8x1xf32> to vector<8x8x64xf32>
    %61 = tpu.concatenate %57, %60 in 2 : vector<8x8x64xf32>, vector<8x8x64xf32> -> vector<8x8x128xf32>
    %62 = vector.shape_cast %53 : vector<8x8xf32> to vector<8x8x1xf32>
    %63 = vector.shape_cast %62 : vector<8x8x1xf32> to vector<8x8x1xf32>
    %64 = vector.broadcast %63 : vector<8x8x1xf32> to vector<8x8x64xf32>
    %65 = vector.shape_cast %54 : vector<8x8xf32> to vector<8x8x1xf32>
    %66 = vector.shape_cast %65 : vector<8x8x1xf32> to vector<8x8x1xf32>
    %67 = vector.broadcast %66 : vector<8x8x1xf32> to vector<8x8x64xf32>
    %68 = tpu.concatenate %64, %67 in 2 : vector<8x8x64xf32>, vector<8x8x64xf32> -> vector<8x8x128xf32>
    %69 = vector.broadcast %18 : vector<8x1x128xf32> to vector<8x8x128xf32>
    %70 = arith.mulf %61, %69 : vector<8x8x128xf32>
    %71 = arith.subf %70, %68 : vector<8x8x128xf32>
    %72 = math.exp %71 : vector<8x8x128xf32>
    %cst_11 = arith.constant dense<0.000000e+00> : vector<8x8xf32>
    %73 = vector.multi_reduction <add>, %72, %cst_11 [2] : vector<8x8x128xf32> to vector<8x8xf32>
    %cst_12 = arith.constant 0.000000e+00 : f32
    %74 = vector.shape_cast %21 : vector<1x1x128xi1> to vector<1x1x128xi1>
    %75 = vector.broadcast %74 : vector<1x1x128xi1> to vector<8x8x128xi1>
    %76 = vector.broadcast %cst_12 : f32 to vector<8x8x128xf32>
    %77 = arith.select %75, %72, %76 : vector<8x8x128xi1>, vector<8x8x128xf32>
    %cst_13 = arith.constant dense<0.000000e+00> : vector<8x8xf32>
    %78 = vector.multi_reduction <add>, %77, %cst_13 [2] : vector<8x8x128xf32> to vector<8x8xf32>
    %79 = arith.subf %73, %78 : vector<8x8xf32>
    %80 = vector.extract_strided_slice %4 {offsets = [0, 16], sizes = [8, 8], strides = [1, 1]} : vector<8x64xf32> to vector<8x8xf32>
    %81 = vector.extract_strided_slice %4 {offsets = [0, 48], sizes = [8, 8], strides = [1, 1]} : vector<8x64xf32> to vector<8x8xf32>
    %82 = vector.extract_strided_slice %16 {offsets = [0, 16], sizes = [8, 8], strides = [1, 1]} : vector<8x64xf32> to vector<8x8xf32>
    %83 = vector.extract_strided_slice %16 {offsets = [0, 48], sizes = [8, 8], strides = [1, 1]} : vector<8x64xf32> to vector<8x8xf32>
    %84 = vector.shape_cast %80 : vector<8x8xf32> to vector<8x8x1xf32>
    %85 = vector.shape_cast %84 : vector<8x8x1xf32> to vector<8x8x1xf32>
    %86 = vector.broadcast %85 : vector<8x8x1xf32> to vector<8x8x64xf32>
    %87 = vector.shape_cast %81 : vector<8x8xf32> to vector<8x8x1xf32>
    %88 = vector.shape_cast %87 : vector<8x8x1xf32> to vector<8x8x1xf32>
    %89 = vector.broadcast %88 : vector<8x8x1xf32> to vector<8x8x64xf32>
    %90 = tpu.concatenate %86, %89 in 2 : vector<8x8x64xf32>, vector<8x8x64xf32> -> vector<8x8x128xf32>
    %91 = vector.shape_cast %82 : vector<8x8xf32> to vector<8x8x1xf32>
    %92 = vector.shape_cast %91 : vector<8x8x1xf32> to vector<8x8x1xf32>
    %93 = vector.broadcast %92 : vector<8x8x1xf32> to vector<8x8x64xf32>
    %94 = vector.shape_cast %83 : vector<8x8xf32> to vector<8x8x1xf32>
    %95 = vector.shape_cast %94 : vector<8x8x1xf32> to vector<8x8x1xf32>
    %96 = vector.broadcast %95 : vector<8x8x1xf32> to vector<8x8x64xf32>
    %97 = tpu.concatenate %93, %96 in 2 : vector<8x8x64xf32>, vector<8x8x64xf32> -> vector<8x8x128xf32>
    %98 = vector.broadcast %18 : vector<8x1x128xf32> to vector<8x8x128xf32>
    %99 = arith.mulf %90, %98 : vector<8x8x128xf32>
    %100 = arith.subf %99, %97 : vector<8x8x128xf32>
    %101 = math.exp %100 : vector<8x8x128xf32>
    %cst_14 = arith.constant dense<0.000000e+00> : vector<8x8xf32>
    %102 = vector.multi_reduction <add>, %101, %cst_14 [2] : vector<8x8x128xf32> to vector<8x8xf32>
    %cst_15 = arith.constant 0.000000e+00 : f32
    %103 = vector.shape_cast %21 : vector<1x1x128xi1> to vector<1x1x128xi1>
    %104 = vector.broadcast %103 : vector<1x1x128xi1> to vector<8x8x128xi1>
    %105 = vector.broadcast %cst_15 : f32 to vector<8x8x128xf32>
    %106 = arith.select %104, %101, %105 : vector<8x8x128xi1>, vector<8x8x128xf32>
    %cst_16 = arith.constant dense<0.000000e+00> : vector<8x8xf32>
    %107 = vector.multi_reduction <add>, %106, %cst_16 [2] : vector<8x8x128xf32> to vector<8x8xf32>
    %108 = arith.subf %102, %107 : vector<8x8xf32>
    %109 = vector.extract_strided_slice %4 {offsets = [0, 24], sizes = [8, 8], strides = [1, 1]} : vector<8x64xf32> to vector<8x8xf32>
    %110 = vector.extract_strided_slice %4 {offsets = [0, 56], sizes = [8, 8], strides = [1, 1]} : vector<8x64xf32> to vector<8x8xf32>
    %111 = vector.extract_strided_slice %16 {offsets = [0, 24], sizes = [8, 8], strides = [1, 1]} : vector<8x64xf32> to vector<8x8xf32>
    %112 = vector.extract_strided_slice %16 {offsets = [0, 56], sizes = [8, 8], strides = [1, 1]} : vector<8x64xf32> to vector<8x8xf32>
    %113 = vector.shape_cast %109 : vector<8x8xf32> to vector<8x8x1xf32>
    %114 = vector.shape_cast %113 : vector<8x8x1xf32> to vector<8x8x1xf32>
    %115 = vector.broadcast %114 : vector<8x8x1xf32> to vector<8x8x64xf32>
    %116 = vector.shape_cast %110 : vector<8x8xf32> to vector<8x8x1xf32>
    %117 = vector.shape_cast %116 : vector<8x8x1xf32> to vector<8x8x1xf32>
    %118 = vector.broadcast %117 : vector<8x8x1xf32> to vector<8x8x64xf32>
    %119 = tpu.concatenate %115, %118 in 2 : vector<8x8x64xf32>, vector<8x8x64xf32> -> vector<8x8x128xf32>
    %120 = vector.shape_cast %111 : vector<8x8xf32> to vector<8x8x1xf32>
    %121 = vector.shape_cast %120 : vector<8x8x1xf32> to vector<8x8x1xf32>
    %122 = vector.broadcast %121 : vector<8x8x1xf32> to vector<8x8x64xf32>
    %123 = vector.shape_cast %112 : vector<8x8xf32> to vector<8x8x1xf32>
    %124 = vector.shape_cast %123 : vector<8x8x1xf32> to vector<8x8x1xf32>
    %125 = vector.broadcast %124 : vector<8x8x1xf32> to vector<8x8x64xf32>
    %126 = tpu.concatenate %122, %125 in 2 : vector<8x8x64xf32>, vector<8x8x64xf32> -> vector<8x8x128xf32>
    %127 = vector.broadcast %18 : vector<8x1x128xf32> to vector<8x8x128xf32>
    %128 = arith.mulf %119, %127 : vector<8x8x128xf32>
    %129 = arith.subf %128, %126 : vector<8x8x128xf32>
    %130 = math.exp %129 : vector<8x8x128xf32>
    %cst_17 = arith.constant dense<0.000000e+00> : vector<8x8xf32>
    %131 = vector.multi_reduction <add>, %130, %cst_17 [2] : vector<8x8x128xf32> to vector<8x8xf32>
    %cst_18 = arith.constant 0.000000e+00 : f32
    %132 = vector.shape_cast %21 : vector<1x1x128xi1> to vector<1x1x128xi1>
    %133 = vector.broadcast %132 : vector<1x1x128xi1> to vector<8x8x128xi1>
    %134 = vector.broadcast %cst_18 : f32 to vector<8x8x128xf32>
    %135 = arith.select %133, %130, %134 : vector<8x8x128xi1>, vector<8x8x128xf32>
    %cst_19 = arith.constant dense<0.000000e+00> : vector<8x8xf32>
    %136 = vector.multi_reduction <add>, %135, %cst_19 [2] : vector<8x8x128xf32> to vector<8x8xf32>
    %137 = arith.subf %131, %136 : vector<8x8xf32>
    %138 = tpu.concatenate %50, %79, %108, %137, %49, %78, %107, %136 in 1 : vector<8x8xf32>, vector<8x8xf32>, vector<8x8xf32>, vector<8x8xf32>, vector<8x8xf32>, vector<8x8xf32>, vector<8x8xf32>, vector<8x8xf32> -> vector<8x64xf32>
    %139 = tpu.reciprocal %138 : vector<8x64xf32> -> vector<8x64xf32>
    %cst_20 = arith.constant dense<0.000000e+00> : vector<8x64xf32>
    %140 = tpu.matmul %139, %2, %cst_20 {dimension_numbers = #tpu.dot_dimension_numbers<[1], [0], [0], [1], [0, 0, 1, 1], [], []>} : vector<8x64xf32>, vector<64x64xf32>, vector<8x64xf32> -> vector<8x64xf32>
    %cst_21 = arith.constant dense<0.000000e+00> : vector<64xf32>
    %141 = vector.multi_reduction <add>, %140, %cst_21 [0] : vector<8x64xf32> to vector<64xf32>
    %142 = vector.shape_cast %141 : vector<64xf32> to vector<1x64xf32>
    %cst_22 = arith.constant 8.000000e+00 : f32
    %143 = vector.broadcast %cst_22 : f32 to vector<1x64xf32>
    %144 = arith.divf %142, %143 : vector<1x64xf32>
    %145 = vector.broadcast %144 : vector<1x64xf32> to vector<8x64xf32>
    %146 = arith.subf %140, %145 : vector<8x64xf32>
    %147 = arith.mulf %146, %146 : vector<8x64xf32>
    %cst_23 = arith.constant dense<0.000000e+00> : vector<64xf32>
    %148 = vector.multi_reduction <add>, %147, %cst_23 [0] : vector<8x64xf32> to vector<64xf32>
    %149 = vector.shape_cast %148 : vector<64xf32> to vector<1x64xf32>
    %cst_24 = arith.constant 8.000000e+00 : f32
    %150 = vector.broadcast %cst_24 : f32 to vector<1x64xf32>
    %151 = arith.divf %149, %150 : vector<1x64xf32>
    %cst_25 = arith.constant 9.99999974E-6 : f32
    %152 = vector.broadcast %cst_25 : f32 to vector<1x64xf32>
    %153 = arith.addf %151, %152 : vector<1x64xf32>
    %154 = math.rsqrt %153 : vector<1x64xf32>
    %155 = vector.broadcast %154 : vector<1x64xf32> to vector<8x64xf32>
    %156 = arith.mulf %146, %155 : vector<8x64xf32>
    %c0_26 = arith.constant 0 : index
    %c0_27 = arith.constant 0 : index
    %157 = vector.load %arg3[%c0_26, %c0_27] : memref<1x64xf32, #tpu.memory_space<vmem>>, vector<1x64xf32>
    %158 = vector.broadcast %157 : vector<1x64xf32> to vector<8x64xf32>
    %159 = arith.mulf %156, %158 : vector<8x64xf32>
    %c0_28 = arith.constant 0 : index
    %c0_29 = arith.constant 0 : index
    %160 = vector.load %arg4[%c0_28, %c0_29] : memref<1x64xf32, #tpu.memory_space<vmem>>, vector<1x64xf32>
    %161 = vector.broadcast %160 : vector<1x64xf32> to vector<8x64xf32>
    %162 = arith.addf %159, %161 : vector<8x64xf32>
    %cst_30 = arith.constant 0.000000e+00 : f32
    %163 = vector.broadcast %cst_30 : f32 to vector<8x64xf32>
    %164 = arith.maximumf %162, %163 : vector<8x64xf32>
    %c0_31 = arith.constant 0 : index
    %c0_32 = arith.constant 0 : index
    %165 = vector.load %arg5[%c0_31, %c0_32] : memref<8x64xf32, #tpu.memory_space<vmem>>, vector<8x64xf32>
    tpu.vector_store %arg5[%c0_31, %c0_32], %164 {strides = array<i32>} : memref<8x64xf32, #tpu.memory_space<vmem>>, vector<8x64xf32>,
    return
  }
}

</mosaic_0001>

<bundles_post_ra>
// kernel: cross_modal_forward.1
= control target key start
LH: loop header
LB: loop body
LE: loop exit
PB: predicated region body
PF: predicated region fallthrough
CT: control target
= control target key end

     0   :  { %10 = vsyncpa [#allocation3], 0  ;;  %s2922_s0 = inlined_call_operand.hbm [shape: f32[8,64], index: 0, kind: input, shape index: {}]   ;;  %s2923_s1 = inlined_call_operand.hbm [shape: f32[8,64], index: 1, kind: input, shape index: {}]   ;;  %s2924_s2 = inlined_call_operand.hbm [shape: f32[64,64], index: 2, kind: input, shape index: {}]   ;;  %s2925_s3 = inlined_call_operand.vmem [shape: f32[1,64], index: 3, kind: input, shape index: {}]   ;;  %s2926_s4 = inlined_call_operand.vmem [shape: f32[1,64], index: 4, kind: input, shape index: {}]   ;;  %s2927_s5 = inlined_call_operand.hbm [shape: f32[8,64], index: 5, kind: output, shape index: {}]  }
   0x1   :  { %11 = vsyncpa [#allocation6], 0 }
   0x2   :  { %12 = vsyncpa [#allocation4], 0  ;;  %s1881_s18 = smov [#allocation5]   ;;  %s1882_s20 = smov [#allocation2]  }
   0x3   :  { %s29_s19 = sshll.u32 %s1881_s18, 4  ;;  %s19_s21 = sshll.u32 %s1882_s20, 4  ;;  %s30_s19 = int_to_ptr.vmem [resolvable:$true] %s29_s19  ;;  %s20_s21 = int_to_ptr.vmem [resolvable:$true] %s19_s21 }
   0x4   :  { %s1787_s24 = scalar_lea.hbm %s2923_s1, 128 }
   0x5   :  { %p1788_p0 = scmp.ne.s32.totalorder %s2923_s1, %s1787_s24  ;;  %p1791_p1 = scmp.lt.u32.totalorder %s1787_s24, %s2923_s1 }
   0x7   :  { %p1793_p2 = pnand %p1791_p1, %p1788_p0 }
   0x9   :  { %1796 = shalt.err (!%p1793_p2)
}
   0xa   :  { %s1797_s29 = scalar_lea.vmem %s30_s19, 128  ;;  %p1802_p4 = scmp.lt.s32.totalorder %s30_s19, %s30_s19 }
   0xb   :  { %p1798_p3 = scmp.ne.s32.totalorder %s30_s19, %s1797_s29  ;;  %p1803_p5 = scmp.lt.s32.totalorder %s1797_s29, %s1797_s29 }
   0xd   :  { %p1804_p6 = por %p1803_p5, %p1802_p4 }
   0xf   :  { %p1805_p7 = pnand %p1804_p6, %p1798_p3 }
  0x11   :  { %1808 = shalt.err (!%p1805_p7)
}
  0x12   :  { %32 = dma.hbm_to_vmem [thread:$0]  %s2923_s1, 128, %s30_s19, [#allocation6]  }
  0x13   :  { %s1809_s9 = scalar_lea.hbm %s2922_s0, 128 }
  0x14   :  { %p1810_p8 = scmp.ne.s32.totalorder %s2922_s0, %s1809_s9  ;;  %p1813_p9 = scmp.lt.u32.totalorder %s1809_s9, %s2922_s0 }
  0x16   :  { %p1815_p10 = pnand %p1813_p9, %p1810_p8 }
  0x18   :  { %1818 = shalt.err (!%p1815_p10)
}
  0x19   :  { %s1819_s14 = scalar_lea.vmem %s20_s21, 128  ;;  %p1824_p12 = scmp.lt.s32.totalorder %s20_s21, %s20_s21 }
  0x1a   :  { %p1820_p11 = scmp.ne.s32.totalorder %s20_s21, %s1819_s14  ;;  %p1825_p13 = scmp.lt.s32.totalorder %s1819_s14, %s1819_s14 }
  0x1c   :  { %p1826_p0 = por %p1825_p13, %p1824_p12 }
  0x1e   :  { %p1827_p1 = pnand %p1826_p0, %p1820_p11 }
  0x20   :  { %1830 = shalt.err (!%p1827_p1)
}
  0x21   :  { %22 = dma.hbm_to_vmem [thread:$0]  %s2922_s0, 128, %s20_s21, [#allocation3]  }
  0x22   :  { %s1883_s16 = smov [#allocation7]   ;;  %s1831_s20 = scalar_lea.hbm %s2924_s2, 1024 }
  0x23   :  { %s38_s17 = sshll.u32 %s1883_s16, 4  ;;  %p1832_p2 = scmp.ne.s32.totalorder %s2924_s2, %s1831_s20  ;;  %s39_s17 = int_to_ptr.vmem [resolvable:$true] %s38_s17 }
  0x24   :  { %p1835_p3 = scmp.lt.u32.totalorder %s1831_s20, %s2924_s2 }
  0x26   :  { %p1837_p4 = pnand %p1835_p3, %p1832_p2 }
  0x28   :  { %1840 = shalt.err (!%p1837_p4)
}
  0x29   :  { %s1841_s26 = scalar_lea.vmem %s39_s17, 1024  ;;  %p1846_p6 = scmp.lt.s32.totalorder %s39_s17, %s39_s17 }
  0x2a   :  { %p1842_p5 = scmp.ne.s32.totalorder %s39_s17, %s1841_s26  ;;  %p1847_p7 = scmp.lt.s32.totalorder %s1841_s26, %s1841_s26 }
  0x2c   :  { %p1848_p8 = por %p1847_p7, %p1846_p6 }
  0x2e   :  { %p1849_p9 = pnand %p1848_p8, %p1842_p5 }
  0x30   :  { %1852 = shalt.err (!%p1849_p9)
}
  0x31   :  { %s1884_s0 = smov 128   ;;  %s1885_s21 = smov 8  }
  0x32   :  { %44 = dma.hbm_to_vmem [thread:$0]  %s2924_s2, 1024, %s39_s17, [#allocation6], %s1884_s0, %s1884_s0, %s1885_s21  }
  0x33   :  { %1875 = dma.done.wait [#allocation3], 128  }
  0x34   :  { %1876 = vsyncadd [#allocation3], 4294967168 }
  0x35   :  { %1877 = dma.done.wait [#allocation6], 1152  }
  0x36   :  { %1878 = vsyncadd [#allocation6], 4294966144  ;;  %v2928_v0 = vlaneseq  ;;  %vm69_vm0 = vcmask 523264   ;;  %v1964_v3 = vld [vmem:[#allocation5] sm:$0xff]  ;;  %v58_v4 = vld [vmem:[#allocation2] sm:$0xff]  ;;  %s1886_s29 = smov 64  }
  0x37   :  { %80 = vrot.lane.b32.xlu1 %v1964_v3, %s1886_s29  ;;  %v70_v5 = vsel %vm69_vm0, %v1964_v3, -inf  ;;  %v1969_v6 = vmul.f32 0.125, %v58_v4  ;;  %v73_v9 = vsel %vm69_vm0, %v1964_v3, inf  ;;  %vm1163_vm3 = vcmask 1041409   ;;  %s1891_s8 = smov [#allocation8]  }
  0x38   :  { %v1959_v1 = vshrl.u32 %v2928_v0, 7  ;;  %71 = vmax.xlane.f32.xlu0 %v70_v5  ;;  %vm1889_vm4 = vmmov 0   ;;  %vm1165_vm5 = vcmask 1042434   ;;  %vm1167_vm6 = vcmask 1043459   ;;  %s1655_s9 = sshll.u32 %s1891_s8, 4  ;;  %s1656_s9 = int_to_ptr.vmem [resolvable:$true] %s1655_s9 }
  0x39   :  { %vm76_vm1 = vcmp.ge.f32.partialorder %v1969_v6, 0.0  ;;  %vm1169_vm7 = vcmask 1044484   ;;  %vm1171_vm8 = vcmask 1045509   ;;  %vm1173_vm9 = vcmask 1046534   ;;  %s1853_s10 = scalar_lea.vmem %s1656_s9, 128  ;;  %p1858_p11 = scmp.lt.s32.totalorder %s1656_s9, %s1656_s9 }
  0x3a   :  { %2932 = vst [vmem:[#allocation12_spill] sm:$0xff] %v1959_v1  ;;  %v1962_v2 = vsub.s32 0, %v1959_v1  ;;  %v153_v7 = vsub.s32 2, %v1959_v1  ;;  %v160_v11 = vsub.s32 3, %v1959_v1  ;;  %v167_v13 = vsub.s32 4, %v1959_v1  ;;  %p1854_p10 = scmp.ne.s32.totalorder %s1656_s9, %s1853_s10  ;;  %p1859_p12 = scmp.lt.s32.totalorder %s1853_s10, %s1853_s10 }
  0x3b   :  { %v174_v15 = vsub.s32 5, %v1959_v1  ;;  %v181_v17 = vsub.s32 6, %v1959_v1  ;;  %v2929_v19 = vsub.s32 7, %v1959_v1  ;;  %v146_v20 = vsub.s32 1, %v1959_v1 }
  0x3c   :  { %v140_v8 = vrot.slane %v1969_v6, %v1962_v2  ;;  %v154_v10 = vrot.slane %v1969_v6, %v153_v7  ;;  %74 = vmin.xlane.f32.xlu0 %v73_v9  ;;  %v161_v12 = vrot.slane %v1969_v6, %v160_v11  ;;  %v1987_v14 = vrot.slane %v1969_v6, %v167_v13  ;;  %p1860_p13 = por %p1859_p12, %p1858_p11 }
  0x3d   :  { %v1994_v16 = vrot.slane %v1969_v6, %v174_v15  ;;  %v2001_v18 = vrot.slane %v1969_v6, %v181_v17  ;;  %v2009_v21 = vrot.slane %v1969_v6, %v2929_v19  ;;  %v147_v22 = vrot.slane %v1969_v6, %v146_v20 }
  0x3e   :  { %142 = vbcast.lane.b32.xlu1 %v140_v8, 256  ;;  %vm1521_vm10 = vcmask 64512   ;;  %vm1175_vm11 = vcmask 1047559   ;;  %vm1523_vm12 = vcmask 130048   ;;  %vm1525_vm13 = vcmask 195584   ;;  %p1861_p0 = pnand %p1860_p13, %p1854_p10 }
  0x3f   :  { %vm1527_vm14 = vcmask 261120   ;;  %vm1529_vm15 = vcmask 326656  }
  0x42   :  { %156 = vbcast.lane.b32.xlu1 %v154_v10, 256 }
  0x46   :  { %163 = vbcast.lane.b32.xlu1 %v161_v12, 256 }
  0x4a   :  { %170 = vbcast.lane.b32.xlu1 %v1987_v14, 256 }
  0x4e   :  { %177 = vbcast.lane.b32.xlu1 %v1994_v16, 256 }
  0x52   :  { %184 = vbcast.lane.b32.xlu1 %v2001_v18, 256  ;;  %149 = vbcast.lane.b32.xlu0 %v147_v22, 256 }
  0x56   :  { %191 = vbcast.lane.b32.xlu1 %v2009_v21, 256  ;;  %195 = vbcast.lane.b32.xlu0 %v140_v8, 288 }
  0x5a   :  { %199 = vbcast.lane.b32.xlu1 %v147_v22, 288  ;;  %203 = vbcast.lane.b32.xlu0 %v154_v10, 288 }
  0x5e   :  { %453 = vbcast.lane.b32.xlu1 %v140_v8, 264  ;;  %457 = vbcast.lane.b32.xlu0 %v147_v22, 264 }
  0x62   :  { %485 = vbcast.lane.b32.xlu1 %v140_v8, 296  ;;  %489 = vbcast.lane.b32.xlu0 %v147_v22, 296 }
  0x66   :  { %461 = vbcast.lane.b32.xlu1 %v154_v10, 264  ;;  %493 = vbcast.lane.b32.xlu0 %v154_v10, 296 }
  0x6a   :  { %677 = vbcast.lane.b32.xlu1 %v140_v8, 272  ;;  %681 = vbcast.lane.b32.xlu0 %v147_v22, 272 }
  0x6e   :  { %709 = vbcast.lane.b32.xlu1 %v140_v8, 304  ;;  %713 = vbcast.lane.b32.xlu0 %v147_v22, 304 }
  0x72   :  { %207 = vbcast.lane.b32.xlu1 %v161_v12, 288  ;;  %465 = vbcast.lane.b32.xlu0 %v161_v12, 264 }
  0x76   :  { %497 = vbcast.lane.b32.xlu1 %v161_v12, 296  ;;  %685 = vbcast.lane.b32.xlu0 %v154_v10, 272 }
  0x7a   :  { %717 = vbcast.lane.b32.xlu1 %v154_v10, 304  ;;  %901 = vbcast.lane.b32.xlu0 %v140_v8, 280 }
  0x7e   :  { %905 = vbcast.lane.b32.xlu1 %v147_v22, 280  ;;  %933 = vbcast.lane.b32.xlu0 %v140_v8, 312 }
  0x82   :  { %937 = vbcast.lane.b32.xlu1 %v147_v22, 312  ;;  %211 = vbcast.lane.b32.xlu0 %v1987_v14, 288 }
  0x86   :  { %469 = vbcast.lane.b32.xlu1 %v1987_v14, 264  ;;  %501 = vbcast.lane.b32.xlu0 %v1987_v14, 296 }
  0x8a   :  { %689 = vbcast.lane.b32.xlu1 %v161_v12, 272  ;;  %721 = vbcast.lane.b32.xlu0 %v161_v12, 304 }
  0x8e   :  { %909 = vbcast.lane.b32.xlu1 %v154_v10, 280  ;;  %941 = vbcast.lane.b32.xlu0 %v154_v10, 312 }
  0x92   :  { %215 = vbcast.lane.b32.xlu1 %v1994_v16, 288  ;;  %473 = vbcast.lane.b32.xlu0 %v1994_v16, 264 }
  0x96   :  { %505 = vbcast.lane.b32.xlu1 %v1994_v16, 296  ;;  %693 = vbcast.lane.b32.xlu0 %v1987_v14, 272 }
  0x9a   :  { %725 = vbcast.lane.b32.xlu1 %v1987_v14, 304  ;;  %913 = vbcast.lane.b32.xlu0 %v161_v12, 280 }
  0x9e   :  { %945 = vbcast.lane.b32.xlu1 %v161_v12, 312  ;;  %219 = vbcast.lane.b32.xlu0 %v2001_v18, 288 }
  0xa9   :  { %v2022_v23 = vpop.permute.xlu1 %80 }
  0xb0   :  { %v2024_v24 = vpop.permute.xlu1 %142 }
  0xb4   :  { %v2026_v25 = vpop.permute.xlu1 %156 }
  0xb8   :  { %v2028_v26 = vpop.permute.xlu1 %163 }
  0xbc   :  { %v2030_v27 = vpop.permute.xlu1 %170 }
  0xbd   :  { %2933 = vst [vmem:[#allocation13_spill] sm:$0xff] %v2030_v27 }
  0xc0   :  { %v2032_v29 = vpop.permute.xlu1 %177 }
  0xc1   :  { %2934 = vst [vmem:[#allocation14_spill] sm:$0xff] %v2032_v29 }
  0xc4   :  { %v2038_v33 = vpop.permute.xlu1 %184 }
  0xc5   :  { %v72_v28 = vpop.xlane.xlu0 %71  ;;  %2935 = vst [vmem:[#allocation15_spill] sm:$0xff] %v2038_v33  ;;  %v2952_v33 = vsub.s32 7, %v1959_v1 }
  0xc8   :  { %v2047_v38 = vpop.permute.xlu1 %191 }
  0xc9   :  { %v75_v30 = vpop.xlane.xlu0 %74  ;;  %2936 = vst [vmem:[#allocation16_spill] sm:$0xff] %v2047_v38 }
  0xca   :  { %v77_v31 = vsel %vm76_vm1, %v72_v28, %v75_v30  ;;  %vm1531_vm1 = vcmask 392192  }
  0xcb   :  { %v2036_v32 = vmul.f32 %v77_v31, %v1969_v6 }
  0xcc   :  { %v2051_v40 = vpop.permute.xlu1 %199 }
  0xcd   :  { %v2040_v34 = vpop.permute.xlu0 %149  ;;  %v243_v35 = vrot.slane %v2036_v32, %v146_v20  ;;  %v236_v36 = vrot.slane %v2036_v32, %v1962_v2  ;;  %v250_v42 = vrot.slane %v2036_v32, %v153_v7  ;;  %v2071_v48 = vrot.slane %v2036_v32, %v160_v11 }
  0xce   :  { %v2094_v56 = vrot.slane %v2036_v32, %v167_v13  ;;  %v2129_v6 = vrot.slane %v2036_v32, %v174_v15  ;;  %v278_v22 = vrot.slane %v2036_v32, %v181_v17 }
  0xcf   :  { %245 = vbcast.lane.b32.xlu1 %v243_v35, 256  ;;  %238 = vbcast.lane.b32.xlu0 %v236_v36, 256 }
  0xd0   :  { %v2058_v43 = vpop.permute.xlu1 %453 }
  0xd1   :  { %v2045_v37 = vpop.permute.xlu0 %195 }
  0xd3   :  { %295 = vbcast.lane.b32.xlu1 %v243_v35, 288  ;;  %291 = vbcast.lane.b32.xlu0 %v236_v36, 288 }
  0xd4   :  { %v2062_v45 = vpop.permute.xlu1 %485 }
  0xd5   :  { %v2049_v39 = vpop.permute.xlu0 %203 }
  0xd7   :  { %529 = vbcast.lane.b32.xlu1 %v243_v35, 264  ;;  %525 = vbcast.lane.b32.xlu0 %v236_v36, 264 }
  0xd8   :  { %v2066_v47 = vpop.permute.xlu1 %461 }
  0xd9   :  { %v2053_v41 = vpop.permute.xlu0 %457 }
  0xdb   :  { %561 = vbcast.lane.b32.xlu1 %v243_v35, 296  ;;  %557 = vbcast.lane.b32.xlu0 %v236_v36, 296 }
  0xdc   :  { %v2077_v50 = vpop.permute.xlu1 %677 }
  0xdd   :  { %v2060_v44 = vpop.permute.xlu0 %489 }
  0xdf   :  { %252 = vbcast.lane.b32.xlu1 %v250_v42, 256  ;;  %299 = vbcast.lane.b32.xlu0 %v250_v42, 288 }
  0xe0   :  { %v2083_v52 = vpop.permute.xlu1 %709 }
  0xe1   :  { %v2064_v46 = vpop.permute.xlu0 %493 }
  0xe3   :  { %533 = vbcast.lane.b32.xlu1 %v250_v42, 264  ;;  %565 = vbcast.lane.b32.xlu0 %v250_v42, 296 }
  0xe4   :  { %v2087_v54 = vpop.permute.xlu1 %207 }
  0xe5   :  { %v2073_v49 = vpop.permute.xlu0 %681 }
  0xe7   :  { %749 = vbcast.lane.b32.xlu1 %v236_v36, 272  ;;  %753 = vbcast.lane.b32.xlu0 %v243_v35, 272 }
  0xe8   :  { %v2096_v57 = vpop.permute.xlu1 %497 }
  0xe9   :  { %v2081_v51 = vpop.permute.xlu0 %713 }
  0xeb   :  { %781 = vbcast.lane.b32.xlu1 %v236_v36, 304  ;;  %785 = vbcast.lane.b32.xlu0 %v243_v35, 304 }
  0xec   :  { %v2104_v59 = vpop.permute.xlu1 %717 }
  0xed   :  { %v2085_v53 = vpop.permute.xlu0 %465 }
  0xef   :  { %303 = vbcast.lane.b32.xlu1 %v2071_v48, 288  ;;  %259 = vbcast.lane.b32.xlu0 %v2071_v48, 256 }
  0xf0   :  { %v2110_v61 = vpop.permute.xlu1 %905 }
  0xf1   :  { %v2089_v55 = vpop.permute.xlu0 %685 }
  0xf3   :  { %569 = vbcast.lane.b32.xlu1 %v2071_v48, 296  ;;  %537 = vbcast.lane.b32.xlu0 %v2071_v48, 264 }
  0xf4   :  { %v2118_v63 = vpop.permute.xlu1 %937 }
  0xf5   :  { %v2100_v58 = vpop.permute.xlu0 %901 }
  0xf7   :  { %789 = vbcast.lane.b32.xlu1 %v250_v42, 304  ;;  %757 = vbcast.lane.b32.xlu0 %v250_v42, 272 }
  0xf8   :  { %v2124_v5 = vpop.permute.xlu1 %469 }
  0xf9   :  { %v2108_v60 = vpop.permute.xlu0 %933  ;;  %2939 = vst [vmem:[#allocation19_spill] sm:$0xff] %v2124_v5 }
  0xfb   :  { %977 = vbcast.lane.b32.xlu1 %v243_v35, 280  ;;  %973 = vbcast.lane.b32.xlu0 %v236_v36, 280 }
  0xfc   :  { %v2135_v8 = vpop.permute.xlu1 %689 }
  0xfd   :  { %v2114_v62 = vpop.permute.xlu0 %211  ;;  %2941 = vst [vmem:[#allocation21_spill] sm:$0xff] %v2135_v8 }
  0xfe   :  { %2937 = vst [vmem:[#allocation17_spill] sm:$0xff] %v2114_v62 }
  0xff   :  { %1009 = vbcast.lane.b32.xlu1 %v243_v35, 312  ;;  %1005 = vbcast.lane.b32.xlu0 %v236_v36, 312 }
 0x100   :  { %v2141_v10 = vpop.permute.xlu1 %909 }
 0x101   :  { %v2122_v4 = vpop.permute.xlu0 %501  ;;  %2943 = vst [vmem:[#allocation23_spill] sm:$0xff] %v2141_v10 }
 0x102   :  { %2938 = vst [vmem:[#allocation18_spill] sm:$0xff] %v2122_v4 }
 0x103   :  { %266 = vbcast.lane.b32.xlu1 %v2094_v56, 256  ;;  %307 = vbcast.lane.b32.xlu0 %v2094_v56, 288 }
 0x104   :  { %v2149_v12 = vpop.permute.xlu1 %215 }
 0x105   :  { %v2131_v7 = vpop.permute.xlu0 %721  ;;  %2945 = vst [vmem:[#allocation25_spill] sm:$0xff] %v2149_v12 }
 0x106   :  { %2940 = vst [vmem:[#allocation20_spill] sm:$0xff] %v2131_v7 }
 0x107   :  { %477 = vbcast.lane.b32.xlu1 %v2001_v18, 264  ;;  %509 = vbcast.lane.b32.xlu0 %v2001_v18, 296 }
 0x108   :  { %v2153_v13 = vpop.permute.xlu1 %505 }
 0x109   :  { %v2139_v9 = vpop.permute.xlu0 %941  ;;  %2946 = vst [vmem:[#allocation26_spill] sm:$0xff] %v2153_v13 }
 0x10a   :  { %2942 = vst [vmem:[#allocation22_spill] sm:$0xff] %v2139_v9 }
 0x10b   :  { %541 = vbcast.lane.b32.xlu1 %v2094_v56, 264  ;;  %573 = vbcast.lane.b32.xlu0 %v2094_v56, 296 }
 0x10c   :  { %v2159_v15 = vpop.permute.xlu1 %725 }
 0x10d   :  { %v2145_v11 = vpop.permute.xlu0 %473  ;;  %2948 = vst [vmem:[#allocation28_spill] sm:$0xff] %v2159_v15 }
 0x10e   :  { %2944 = vst [vmem:[#allocation24_spill] sm:$0xff] %v2145_v11 }
 0x10f   :  { %697 = vbcast.lane.b32.xlu1 %v1994_v16, 272  ;;  %729 = vbcast.lane.b32.xlu0 %v1994_v16, 304 }
 0x110   :  { %v2169_v28 = vpop.permute.xlu1 %945 }
 0x111   :  { %2950 = vst [vmem:[#allocation30_spill] sm:$0xff] %v2169_v28 }
 0x113   :  { %761 = vbcast.lane.b32.xlu1 %v2071_v48, 272  ;;  %793 = vbcast.lane.b32.xlu0 %v2071_v48, 304 }
 0x117   :  { %917 = vbcast.lane.b32.xlu1 %v1987_v14, 280  ;;  %949 = vbcast.lane.b32.xlu0 %v1987_v14, 312  ;;  %v2155_v14 = vpop.permute.xlu0 %693 }
 0x118   :  { %2947 = vst [vmem:[#allocation27_spill] sm:$0xff] %v2155_v14 }
 0x11b   :  { %981 = vbcast.lane.b32.xlu1 %v250_v42, 280  ;;  %1013 = vbcast.lane.b32.xlu0 %v250_v42, 312  ;;  %v2161_v20 = vpop.permute.xlu0 %913 }
 0x11c   :  { %2949 = vst [vmem:[#allocation29_spill] sm:$0xff] %v2161_v20 }
 0x11f   :  { %223 = vbcast.lane.b32.xlu1 %v2009_v21, 288  ;;  %273 = vbcast.lane.b32.xlu0 %v2129_v6, 256  ;;  %v2171_v30 = vpop.permute.xlu0 %219 }
 0x120   :  { %2951 = vst [vmem:[#allocation31_spill] sm:$0xff] %v2171_v30  ;;  %v285_v30 = vrot.slane %v2036_v32, %v2952_v33  ;;  %v1887_v32 = vmov 1966171168  }
 0x121   :  { %v87_v33 = vunpack.c.l.s4 %v1887_v32 }
 0x123   :  { %311 = vbcast.lane.b32.xlu1 %v2129_v6, 288  ;;  %481 = vbcast.lane.b32.xlu0 %v2009_v21, 264  ;;  %v88_v29 = vunpack.c.0.s8 %v87_v33 }
 0x125   :  { %v2227_v9 = vsub.s32 %v88_v29, %v1959_v1 }
 0x127   :  { %513 = vbcast.lane.b32.xlu1 %v2009_v21, 296  ;;  %545 = vbcast.lane.b32.xlu0 %v2129_v6, 264 }
 0x12b   :  { %577 = vbcast.lane.b32.xlu1 %v2129_v6, 296  ;;  %701 = vbcast.lane.b32.xlu0 %v2001_v18, 272 }
 0x12f   :  { %733 = vbcast.lane.b32.xlu1 %v2001_v18, 304  ;;  %765 = vbcast.lane.b32.xlu0 %v2094_v56, 272 }
 0x133   :  { %797 = vbcast.lane.b32.xlu1 %v2094_v56, 304  ;;  %921 = vbcast.lane.b32.xlu0 %v1994_v16, 280 }
 0x137   :  { %953 = vbcast.lane.b32.xlu1 %v1994_v16, 312  ;;  %985 = vbcast.lane.b32.xlu0 %v2071_v48, 280 }
 0x13b   :  { %1017 = vbcast.lane.b32.xlu1 %v2071_v48, 312  ;;  %280 = vbcast.lane.b32.xlu0 %v278_v22, 256 }
 0x13f   :  { %315 = vbcast.lane.b32.xlu1 %v278_v22, 288  ;;  %549 = vbcast.lane.b32.xlu0 %v278_v22, 264 }
 0x141   :  { %v2173_v31 = vpop.permute.xlu1 %245  ;;  %v2175_v35 = vpop.permute.xlu0 %238 }
 0x143   :  { %581 = vbcast.lane.b32.xlu1 %v278_v22, 296  ;;  %705 = vbcast.lane.b32.xlu0 %v2009_v21, 272 }
 0x145   :  { %v2178_v16 = vpop.permute.xlu1 %295  ;;  %v292_v36 = vpop.permute.xlu0 %291 }
 0x147   :  { %737 = vbcast.lane.b32.xlu1 %v2009_v21, 304  ;;  %769 = vbcast.lane.b32.xlu0 %v2129_v6, 272 }
 0x149   :  { %v2182_v17 = vpop.permute.xlu1 %529  ;;  %v2184_v42 = vpop.permute.xlu0 %525 }
 0x14b   :  { %801 = vbcast.lane.b32.xlu1 %v2129_v6, 304  ;;  %925 = vbcast.lane.b32.xlu0 %v2001_v18, 280 }
 0x14d   :  { %v2188_v48 = vpop.permute.xlu1 %561  ;;  %v2190_v0 = vpop.permute.xlu0 %557 }
 0x14f   :  { %957 = vbcast.lane.b32.xlu1 %v2001_v18, 312  ;;  %989 = vbcast.lane.b32.xlu0 %v2094_v56, 280 }
 0x151   :  { %v2194_v19 = vpop.permute.xlu1 %252  ;;  %v2196_v38 = vpop.permute.xlu0 %299 }
 0x153   :  { %1021 = vbcast.lane.b32.xlu1 %v2094_v56, 312  ;;  %287 = vbcast.lane.b32.xlu0 %v285_v30, 256 }
 0x155   :  { %v2202_v20 = vpop.permute.xlu1 %533  ;;  %v2204_v28 = vpop.permute.xlu0 %565 }
 0x157   :  { %319 = vbcast.lane.b32.xlu1 %v285_v30, 288  ;;  %553 = vbcast.lane.b32.xlu0 %v285_v30, 264 }
 0x159   :  { %v2206_v18 = vpop.permute.xlu1 %749  ;;  %v2208_v14 = vpop.permute.xlu0 %753 }
 0x15b   :  { %585 = vbcast.lane.b32.xlu1 %v285_v30, 296  ;;  %773 = vbcast.lane.b32.xlu0 %v278_v22, 272 }
 0x15d   :  { %v2210_v15 = vpop.permute.xlu1 %781  ;;  %v2212_v11 = vpop.permute.xlu0 %785 }
 0x15f   :  { %805 = vbcast.lane.b32.xlu1 %v278_v22, 304  ;;  %929 = vbcast.lane.b32.xlu0 %v2009_v21, 280 }
 0x161   :  { %v2215_v56 = vpop.permute.xlu1 %303  ;;  %v2217_v13 = vpop.permute.xlu0 %259 }
 0x163   :  { %961 = vbcast.lane.b32.xlu1 %v2009_v21, 312  ;;  %993 = vbcast.lane.b32.xlu0 %v2129_v6, 280  ;;  %v2236_v21 = vsel %vm69_vm0, %v1964_v3, %v2022_v23 }
 0x164   :  { %v92_v33 = vrot.slane %v2236_v21, %v2227_v9 }
 0x165   :  { %v2221_v12 = vpop.permute.xlu1 %569  ;;  %v2223_v10 = vpop.permute.xlu0 %537 }
 0x166   :  { %v108_v29 = vrot.slane %v92_v33, %v2227_v9  ;;  %v100_v4 = vcombine.high %v92_v33, %v92_v33 }
 0x167   :  { %1025 = vbcast.lane.b32.xlu1 %v2129_v6, 312  ;;  %777 = vbcast.lane.b32.xlu0 %v285_v30, 272 }
 0x168   :  { %v2250_v3 = vrot.slane %v108_v29, %v1962_v2  ;;  %v2257_v62 = vrot.slane %v100_v4, %v2227_v9  ;;  %v226_v4 = vsel %vm69_vm0, %v2040_v34, %v2051_v40  ;;  %v516_v34 = vsel %vm69_vm0, %v2053_v41, %v2060_v44 }
 0x169   :  { %v2229_v32 = vpop.permute.xlu1 %789  ;;  %v2231_v8 = vpop.permute.xlu0 %757  ;;  %v515_v40 = vsel %vm69_vm0, %v2058_v43, %v2062_v45  ;;  %v227_v44 = vsel %vm69_vm0, %v2026_v25, %v2049_v39  ;;  %v517_v25 = vsel %vm69_vm0, %v2066_v47, %v2064_v46 }
 0x16a   :  { %v595_v43 = vmul.f32 %v515_v40, %v2250_v3 }
 0x16b   :  { %809 = vbcast.lane.b32.xlu1 %v285_v30, 304  ;;  %997 = vbcast.lane.b32.xlu0 %v278_v22, 280 }
 0x16d   :  { %v2240_v7 = vpop.permute.xlu1 %977  ;;  %v2242_v6 = vpop.permute.xlu0 %973 }
 0x16e   :  { %2953 = vst [vmem:[#allocation32_spill] sm:$0xff] %v2240_v7  ;;  %2954 = vst [vmem:[#allocation33_spill] sm:$0xff] %v2242_v6  ;;  %v321_v6 = vsel %vm69_vm0, %v2175_v35, %v292_v36 }
 0x16f   :  { %1029 = vbcast.lane.b32.xlu1 %v278_v22, 312  ;;  %1001 = vbcast.lane.b32.xlu0 %v285_v30, 280  ;;  %v225_v22 = vsel %vm69_vm0, %v2024_v24, %v2045_v37  ;;  %v322_v24 = vsel %vm69_vm0, %v2173_v31, %v2178_v16 }
 0x170   :  { %v369_v33 = vmul.f32 %v2250_v3, %v225_v22 }
 0x171   :  { %v2245_v1 = vpop.permute.xlu1 %1009  ;;  %v2247_v5 = vpop.permute.xlu0 %1005 }
 0x172   :  { %2955 = vst [vmem:[#allocation34_spill] sm:$0xff] %v2245_v1  ;;  %2956 = vst [vmem:[#allocation35_spill] sm:$0xff] %v2247_v5  ;;  %v130_v1 = vcombine.high %v108_v29, %v108_v29 }
 0x173   :  { %1033 = vbcast.lane.b32.xlu1 %v285_v30, 312 }
 0x174   :  { %v2306_v41 = vrot.slane %v130_v1, %v1962_v2 }
 0x175   :  { %v2252_v23 = vpop.permute.xlu1 %266  ;;  %v2254_v27 = vpop.permute.xlu0 %307 }
 0x176   :  { %2957 = vst [vmem:[#allocation36_spill] sm:$0xff] %v2252_v23  ;;  %2958 = vst [vmem:[#allocation37_spill] sm:$0xff] %v2254_v27  ;;  %v2271_v23 = vrot.slane %v2257_v62, %v1962_v2  ;;  %v377_v27 = vsub.f32 %v369_v33, %v321_v6  ;;  %v587_v6 = vsel %vm69_vm0, %v2184_v42, %v2190_v0 }
 0x177   :  { %v323_v0 = vsel %vm69_vm0, %v2194_v19, %v2196_v38  ;;  %v589_v19 = vsel %vm69_vm0, %v2202_v20, %v2204_v28  ;;  %v597_v40 = vmul.f32 %v517_v25, %v2306_v41 }
 0x178   :  { %v370_v36 = vmul.f32 %v2271_v23, %v226_v4  ;;  %v385_v22 = vmul.f32 1.442695, %v377_v27  ;;  %v588_v27 = vsel %vm69_vm0, %v2182_v17, %v2188_v48  ;;  %v596_v16 = vmul.f32 %v516_v34, %v2271_v23 }
 0x179   :  { %v2265_v30 = vpop.permute.xlu1 %477  ;;  %v2267_v5 = vpop.permute.xlu0 %509  ;;  %v603_v17 = vsub.f32 %v595_v43, %v587_v6  ;;  %v371_v4 = vmul.f32 %v2306_v41, %v227_v44  ;;  %v605_v47 = vsub.f32 %v597_v40, %v589_v19  ;;  %v740_v6 = vsel %vm69_vm0, %v2073_v49, %v2081_v51 }
 0x17a   :  { %2959 = vst [vmem:[#allocation38_spill] sm:$0xff] %v2265_v30  ;;  %2960 = vst [vmem:[#allocation39_spill] sm:$0xff] %v2267_v5  ;;  %v378_v30 = vsub.f32 %v370_v36, %v322_v24  ;;  %1719 = vpow2.f32 %v385_v22  ;;  %v604_v45 = vsub.f32 %v596_v16, %v588_v27  ;;  %v132_v16 = vcombine.high %v2257_v62, %v2257_v62 }
 0x17b   :  { %v611_v24 = vmul.f32 1.442695, %v603_v17  ;;  %v379_v36 = vsub.f32 %v371_v4, %v323_v0  ;;  %v739_v43 = vsel %vm69_vm0, %v2077_v50, %v2083_v52  ;;  %v615_v44 = vmul.f32 1.442695, %v605_v47 }
 0x17c   :  { %v387_v31 = vmul.f32 1.442695, %v378_v30  ;;  %v2961_v30 = vlaneseq  ;;  %v613_v39 = vmul.f32 1.442695, %v604_v45  ;;  %v812_v45 = vsel %vm69_vm0, %v2208_v14, %v2212_v11 }
 0x17d   :  { %v2279_v37 = vpop.permute.xlu1 %541  ;;  %v2281_v35 = vpop.permute.xlu0 %573  ;;  %v389_v46 = vmul.f32 1.442695, %v379_v36  ;;  %v820_v17 = vmul.f32 %v740_v6, %v2271_v23  ;;  %v811_v62 = vsel %vm69_vm0, %v2206_v18, %v2210_v15  ;;  %v819_v50 = vmul.f32 %v739_v43, %v2250_v3 }
 0x17e   :  { %1721 = vpow2.f32 %v387_v31  ;;  %v2320_v1 = vand.u32 127, %v2961_v30  ;;  %v2364_v52 = vrot.slane %v132_v16, %v1962_v2  ;;  %v228_v11 = vsel %vm69_vm0, %v2028_v26, %v2087_v54 }
 0x17f   :  { %1723 = vpow2.f32 %v613_v39  ;;  %v828_v14 = vsub.f32 %v820_v17, %v812_v45  ;;  %v827_v15 = vsub.f32 %v819_v50, %v811_v62  ;;  %v324_v30 = vsel %vm69_vm0, %v2217_v13, %v2215_v56 }
 0x180   :  { %vm136_vm2 = vcmp.ge.s32.totalorder %v2320_v1, 64  ;;  %1725 = vpow2.f32 %v611_v24  ;;  %v372_v24 = vmul.f32 %v2364_v52, %v228_v11  ;;  %v518_v26 = vsel %vm69_vm0, %v2085_v53, %v2096_v57 }
 0x181   :  { %v2284_v5 = vpop.permute.xlu1 %697  ;;  %v2286_v7 = vpop.permute.xlu0 %729  ;;  %1727 = vpow2.f32 %v389_v46  ;;  %v837_v54 = vmul.f32 1.442695, %v828_v14  ;;  %v835_v36 = vmul.f32 1.442695, %v827_v15  ;;  %v590_v13 = vsel %vm69_vm0, %v2223_v10, %v2221_v12  ;;  %v2962_v14 = vld [vmem:[#allocation34_spill] sm:$0xff]  ;;  %v2963_v15 = vld [vmem:[#allocation32_spill] sm:$0xff] }
 0x182   :  { %1729 = vpow2.f32 %v615_v44  ;;  %v598_v47 = vmul.f32 %v518_v26, %v2364_v52  ;;  %v741_v57 = vsel %vm69_vm0, %v2089_v55, %v2104_v59  ;;  %v85_v10 = vcombine.high %v2236_v21, %v2236_v21 }
 0x183   :  { %1731 = vpow2.f32 %v837_v54  ;;  %v821_v59 = vmul.f32 %v741_v57, %v2306_v41  ;;  %v964_v62 = vsel %vm69_vm0, %v2110_v61, %v2118_v63  ;;  %v2964_v61 = vld [vmem:[#allocation35_spill] sm:$0xff]  ;;  %v2965_v63 = vld [vmem:[#allocation33_spill] sm:$0xff] }
 0x184   :  { %v1720_v22 = vpop.eup %1719  ;;  %1733 = vpow2.f32 %v835_v36  ;;  %v2408_v21 = vrot.slane %v85_v10, %v2227_v9  ;;  %v2966_v36 = vld [vmem:[#allocation17_spill] sm:$0xff] }
 0x185   :  { %v2301_v29 = vpop.permute.xlu1 %761  ;;  %v2303_v33 = vpop.permute.xlu0 %793  ;;  %v419_v20 = vsel %vm136_vm2, %v1720_v22, 0.0 }
 0x186   :  { %v2424_v50 = vrot.slane %v2408_v21, %v2227_v9 }
 0x188   :  { %v1722_v28 = vpop.eup %1721 }
 0x189   :  { %v2315_v42 = vpop.permute.xlu1 %917  ;;  %v2317_v48 = vpop.permute.xlu0 %949  ;;  %v420_v51 = vsel %vm136_vm2, %v1722_v28, 0.0 }
 0x18a   :  { %v1724_v18 = vpop.eup %1723 }
 0x18b   :  { %v1726_v39 = vpop.eup %1725  ;;  %v644_v40 = vsel %vm136_vm2, %v1724_v18, 0.0 }
 0x18c   :  { %v1728_v46 = vpop.eup %1727  ;;  %v643_v53 = vsel %vm136_vm2, %v1726_v39, 0.0 }
 0x18d   :  { %v2329_v38 = vpop.permute.xlu1 %981  ;;  %v2331_v34 = vpop.permute.xlu0 %1013  ;;  %v421_v43 = vsel %vm136_vm2, %v1728_v46, 0.0 }
 0x18e   :  { %401 = vadd.xlane.f32.xlu0 %v1720_v22  ;;  %v380_v22 = vsub.f32 %v372_v24, %v324_v30  ;;  %v1730_v55 = vpop.eup %1729  ;;  %v1035_v24 = vsel %vm69_vm0, %v2965_v63, %v2964_v61  ;;  %v2973_v61 = vld [vmem:[#allocation21_spill] sm:$0xff] }
 0x18f   :  { %v1732_v30 = vpop.eup %1731 }
 0x190   :  { %v391_v12 = vmul.f32 1.442695, %v380_v22  ;;  %v2967_v22 = vld [vmem:[#allocation13_spill] sm:$0xff] }
 0x191   :  { %v2335_v31 = vpop.permute.xlu1 %223  ;;  %v2337_v27 = vpop.permute.xlu0 %273 }
 0x192   :  { %427 = vadd.xlane.f32.xlu0 %v419_v20  ;;  %v606_v20 = vsub.f32 %v598_v47, %v590_v13  ;;  %1735 = vpow2.f32 %v391_v12  ;;  %v229_v13 = vsel %vm69_vm0, %v2967_v22, %v2966_v36  ;;  %v2968_v47 = vld [vmem:[#allocation37_spill] sm:$0xff]  ;;  %v868_v12 = vsel %vm136_vm2, %v1732_v30, 0.0 }
 0x194   :  { %v617_v44 = vmul.f32 1.442695, %v606_v20 }
 0x195   :  { %v2356_v0 = vpop.permute.xlu1 %311  ;;  %v2358_v49 = vpop.permute.xlu0 %481 }
 0x196   :  { %429 = vadd.xlane.f32.xlu0 %v420_v51  ;;  %v963_v51 = vsel %vm69_vm0, %v2100_v58, %v2108_v60  ;;  %1737 = vpow2.f32 %v617_v44  ;;  %v1734_v60 = vpop.eup %1733 }
 0x197   :  { %403 = vadd.xlane.f32.xlu1 %v1722_v28  ;;  %v813_v28 = vsel %vm69_vm0, %v2231_v8, %v2229_v32  ;;  %v645_v32 = vsel %vm136_vm2, %v1730_v55, 0.0  ;;  %v1043_v54 = vmul.f32 %v963_v51, %v2250_v3  ;;  %v591_v51 = vsel %vm69_vm0, %v2279_v37, %v2281_v35 }
 0x198   :  { %v829_v45 = vsub.f32 %v821_v59, %v813_v28  ;;  %v2971_v59 = vld [vmem:[#allocation19_spill] sm:$0xff]  ;;  %v101_v37 = vcombine.high %v2408_v21, %v2408_v21 }
 0x199   :  { %v2372_v4 = vpop.permute.xlu1 %513  ;;  %v2374_v25 = vpop.permute.xlu0 %545  ;;  %v2975_v21 = vld [vmem:[#allocation23_spill] sm:$0xff] }
 0x19a   :  { %629 = vadd.xlane.f32.xlu0 %v1724_v18  ;;  %v839_v11 = vmul.f32 1.442695, %v829_v45  ;;  %v1036_v18 = vsel %vm69_vm0, %v2963_v15, %v2962_v14 }
 0x19b   :  { %627 = vadd.xlane.f32.xlu1 %v1726_v39  ;;  %v1044_v39 = vmul.f32 %v964_v62, %v2271_v23  ;;  %v2443_v23 = vrot.slane %v2424_v50, %v1962_v2 }
 0x19c   :  { %1739 = vpow2.f32 %v839_v11  ;;  %v1736_v20 = vpop.eup %1735 }
 0x19d   :  { %v2383_v56 = vpop.permute.xlu1 %577  ;;  %v2385_v19 = vpop.permute.xlu0 %701  ;;  %v373_v28 = vmul.f32 %v2443_v23, %v229_v13  ;;  %v422_v15 = vsel %vm136_vm2, %v1736_v20, 0.0 }
 0x19e   :  { %653 = vadd.xlane.f32.xlu0 %v644_v40  ;;  %v1052_v40 = vsub.f32 %v1044_v39, %v1036_v18  ;;  %v2972_v39 = vld [vmem:[#allocation20_spill] sm:$0xff] }
 0x19f   :  { %651 = vadd.xlane.f32.xlu1 %v643_v53  ;;  %v2969_v53 = vld [vmem:[#allocation36_spill] sm:$0xff]  ;;  %v742_v63 = vsel %vm69_vm0, %v2973_v61, %v2972_v39 }
 0x1a0   :  { %v325_v57 = vsel %vm69_vm0, %v2969_v53, %v2968_v47  ;;  %v1061_v45 = vmul.f32 1.442695, %v1052_v40  ;;  %v1738_v18 = vpop.eup %1737  ;;  %v822_v40 = vmul.f32 %v742_v63, %v2364_v52  ;;  %v2489_v53 = vrot.slane %v101_v37, %v2227_v9  ;;  %v2977_v9 = vld [vmem:[#allocation14_spill] sm:$0xff] }
 0x1a1   :  { %v2400_v16 = vpop.permute.xlu1 %733  ;;  %v2402_v6 = vpop.permute.xlu0 %765  ;;  %v381_v62 = vsub.f32 %v373_v28, %v325_v57  ;;  %v646_v22 = vsel %vm136_vm2, %v1738_v18, 0.0  ;;  %v1037_v57 = vsel %vm69_vm0, %v2329_v38, %v2331_v34 }
 0x1a2   :  { %431 = vadd.xlane.f32.xlu0 %v421_v43  ;;  %v867_v43 = vsel %vm136_vm2, %v1734_v60, 0.0  ;;  %1741 = vpow2.f32 %v1061_v45 }
 0x1a3   :  { %405 = vadd.xlane.f32.xlu1 %v1728_v46  ;;  %v1051_v46 = vsub.f32 %v1043_v54, %v1035_v24  ;;  %v393_v35 = vmul.f32 1.442695, %v381_v62 }
 0x1a5   :  { %v2410_v17 = vpop.permute.xlu1 %797  ;;  %v2412_v8 = vpop.permute.xlu0 %921 }
 0x1a6   :  { %655 = vadd.xlane.f32.xlu0 %v645_v32  ;;  %v1059_v32 = vmul.f32 1.442695, %v1051_v46  ;;  %v1740_v13 = vpop.eup %1739  ;;  %v2974_v46 = vld [vmem:[#allocation22_spill] sm:$0xff] }
 0x1a7   :  { %631 = vadd.xlane.f32.xlu1 %v1730_v55  ;;  %v2970_v55 = vld [vmem:[#allocation18_spill] sm:$0xff]  ;;  %v965_v47 = vsel %vm69_vm0, %v2975_v21, %v2974_v46  ;;  %v869_v28 = vsel %vm136_vm2, %v1740_v13, 0.0  ;;  %v815_v21 = vsel %vm69_vm0, %v2402_v6, %v2410_v17 }
 0x1a8   :  { %v519_v44 = vsel %vm69_vm0, %v2971_v59, %v2970_v55  ;;  %1743 = vpow2.f32 %v1059_v32  ;;  %v2976_v55 = vld [vmem:[#allocation25_spill] sm:$0xff]  ;;  %v326_v32 = vsel %vm69_vm0, %v2337_v27, %v2356_v0  ;;  %v592_v27 = vsel %vm69_vm0, %v2374_v25, %v2383_v56 }
 0x1a9   :  { %v2433_v26 = vpop.permute.xlu1 %953  ;;  %v2435_v58 = vpop.permute.xlu0 %985  ;;  %1745 = vpow2.f32 %v393_v35  ;;  %v230_v59 = vsel %vm69_vm0, %v2977_v9, %v2976_v55  ;;  %v131_v9 = vcombine.high %v2424_v50, %v2424_v50 }
 0x1aa   :  { %853 = vadd.xlane.f32.xlu0 %v1732_v30  ;;  %v599_v30 = vmul.f32 %v519_v44, %v2443_v23  ;;  %v2506_v44 = vrot.slane %v2489_v53, %v1962_v2 }
 0x1ab   :  { %851 = vadd.xlane.f32.xlu1 %v1734_v60  ;;  %v814_v60 = vsel %vm69_vm0, %v2301_v29, %v2303_v33 }
 0x1ac   :  { %v607_v24 = vsub.f32 %v599_v30, %v591_v51  ;;  %v830_v33 = vsub.f32 %v822_v40, %v814_v60  ;;  %v1742_v45 = vpop.eup %1741  ;;  %v374_v51 = vmul.f32 %v2506_v44, %v230_v59  ;;  %v2979_v30 = vld [vmem:[#allocation24_spill] sm:$0xff] }
 0x1ad   :  { %v2448_v10 = vpop.permute.xlu1 %1017  ;;  %v2450_v3 = vpop.permute.xlu0 %280  ;;  %v1092_v37 = vsel %vm136_vm2, %v1742_v45, 0.0 }
 0x1ae   :  { %877 = vadd.xlane.f32.xlu0 %v868_v12  ;;  %v619_v29 = vmul.f32 1.442695, %v607_v24  ;;  %v841_v38 = vmul.f32 1.442695, %v830_v33  ;;  %v382_v63 = vsub.f32 %v374_v51, %v326_v32  ;;  %v1038_v6 = vsel %vm69_vm0, %v2435_v58, %v2448_v10  ;;  %v2984_v51 = vld [vmem:[#allocation31_spill] sm:$0xff] }
 0x1af   :  { %875 = vadd.xlane.f32.xlu1 %v867_v43  ;;  %v1045_v43 = vmul.f32 %v965_v47, %v2306_v41 }
 0x1b0   :  { %1747 = vpow2.f32 %v619_v29  ;;  %v395_v46 = vmul.f32 1.442695, %v382_v63 }
 0x1b1   :  { %v2463_v11 = vpop.permute.xlu1 %315  ;;  %v2465_v14 = vpop.permute.xlu0 %549  ;;  %v1053_v34 = vsub.f32 %v1045_v43, %v1037_v57  ;;  %1749 = vpow2.f32 %v841_v38  ;;  %v2983_v43 = vld [vmem:[#allocation29_spill] sm:$0xff] }
 0x1b2   :  { %433 = vadd.xlane.f32.xlu0 %v422_v15  ;;  %v1744_v41 = vpop.eup %1743  ;;  %v327_v10 = vsel %vm69_vm0, %v2450_v3, %v2463_v11 }
 0x1b3   :  { %407 = vadd.xlane.f32.xlu1 %v1736_v20  ;;  %v1063_v61 = vmul.f32 1.442695, %v1053_v34  ;;  %v1746_v35 = vpop.eup %1745  ;;  %v1091_v60 = vsel %vm136_vm2, %v1744_v41, 0.0 }
 0x1b4   :  { %v423_v29 = vsel %vm136_vm2, %v1746_v35, 0.0 }
 0x1b5   :  { %v2478_v54 = vpop.permute.xlu1 %581  ;;  %v2480_v36 = vpop.permute.xlu0 %705  ;;  %1751 = vpow2.f32 %v1063_v61 }
 0x1b6   :  { %657 = vadd.xlane.f32.xlu0 %v646_v22  ;;  %v2980_v22 = vld [vmem:[#allocation28_spill] sm:$0xff]  ;;  %1753 = vpow2.f32 %v395_v46  ;;  %v593_v3 = vsel %vm69_vm0, %v2465_v14, %v2478_v54 }
 0x1b7   :  { %633 = vadd.xlane.f32.xlu1 %v1738_v18  ;;  %v2978_v18 = vld [vmem:[#allocation26_spill] sm:$0xff] }
 0x1b8   :  { %v520_v39 = vsel %vm69_vm0, %v2979_v30, %v2978_v18  ;;  %v2985_v18 = vld [vmem:[#allocation15_spill] sm:$0xff]  ;;  %v2553_v30 = vrot.slane %v131_v9, %v1962_v2 }
 0x1b9   :  { %v2494_v12 = vpop.permute.xlu1 %737  ;;  %v2496_v20 = vpop.permute.xlu0 %769  ;;  %v600_v24 = vmul.f32 %v520_v39, %v2506_v44  ;;  %v231_v50 = vsel %vm69_vm0, %v2985_v18, %v2984_v51 }
 0x1ba   :  { %879 = vadd.xlane.f32.xlu0 %v869_v28  ;;  %v1748_v33 = vpop.eup %1747  ;;  %v2982_v28 = vld [vmem:[#allocation30_spill] sm:$0xff]  ;;  %v375_v63 = vmul.f32 %v2553_v30, %v231_v50 }
 0x1bb   :  { %855 = vadd.xlane.f32.xlu1 %v1740_v13  ;;  %v2981_v13 = vld [vmem:[#allocation27_spill] sm:$0xff]  ;;  %v608_v25 = vsub.f32 %v600_v24, %v592_v27  ;;  %v966_v55 = vsel %vm69_vm0, %v2983_v43, %v2982_v28  ;;  %v647_v34 = vsel %vm136_vm2, %v1748_v33, 0.0 }
 0x1bc   :  { %v743_v40 = vsel %vm69_vm0, %v2981_v13, %v2980_v22  ;;  %v1046_v32 = vmul.f32 %v966_v55, %v2364_v52  ;;  %v383_v22 = vsub.f32 %v375_v63, %v327_v10 }
 0x1bd   :  { %v2511_v62 = vpop.permute.xlu1 %801  ;;  %v2514_v15 = vpop.permute.xlu0 %925  ;;  %v823_v57 = vmul.f32 %v743_v40, %v2443_v23  ;;  %v621_v59 = vmul.f32 1.442695, %v608_v25  ;;  %v744_v25 = vsel %vm69_vm0, %v2284_v5, %v2286_v7  ;;  %v967_v5 = vsel %vm69_vm0, %v2315_v42, %v2317_v48  ;;  %v2988_v42 = vld [vmem:[#allocation16_spill] sm:$0xff] }
 0x1be   :  { %1077 = vadd.xlane.f32.xlu0 %v1742_v45  ;;  %v1750_v45 = vpop.eup %1749  ;;  %v1054_v58 = vsub.f32 %v1046_v32, %v1038_v6  ;;  %v816_v14 = vsel %vm69_vm0, %v2496_v20, %v2511_v62  ;;  %v824_v28 = vmul.f32 %v744_v25, %v2506_v44  ;;  %v133_v7 = vcombine.high %v2489_v53, %v2489_v53 }
 0x1bf   :  { %1075 = vadd.xlane.f32.xlu1 %v1744_v41  ;;  %v831_v38 = vsub.f32 %v823_v57, %v815_v21  ;;  %1755 = vpow2.f32 %v621_v59  ;;  %v870_v52 = vsel %vm136_vm2, %v1750_v45, 0.0  ;;  %v1752_v61 = vpop.eup %1751  ;;  %v397_v21 = vmul.f32 1.442695, %v383_v22 }
 0x1c0   :  { %v1093_v11 = vsel %vm136_vm2, %v1752_v61, 0.0  ;;  %v1754_v40 = vpop.eup %1753  ;;  %v832_v9 = vsub.f32 %v824_v28, %v816_v14  ;;  %v232_v48 = vsel %vm69_vm0, %v2988_v42, %v2335_v31  ;;  %v2594_v53 = vrot.slane %v133_v7, %v1962_v2 }
 0x1c1   :  { %v2522_v0 = vpop.permute.xlu1 %957  ;;  %v990_v56 = vpop.permute.xlu0 %989  ;;  %v843_v39 = vmul.f32 1.442695, %v831_v38  ;;  %v424_v54 = vsel %vm136_vm2, %v1754_v40, 0.0  ;;  %v1047_v38 = vmul.f32 %v967_v5, %v2443_v23  ;;  %v522_v31 = vsel %vm69_vm0, %v2358_v49, %v2372_v4 }
 0x1c2   :  { %1101 = vadd.xlane.f32.xlu0 %v1092_v37  ;;  %v2986_v37 = vld [vmem:[#allocation39_spill] sm:$0xff]  ;;  %v376_v51 = vmul.f32 %v2594_v53, %v232_v48 }
 0x1c3   :  { %1099 = vadd.xlane.f32.xlu1 %v1091_v60  ;;  %1757 = vpow2.f32 %v843_v39  ;;  %v1065_v60 = vmul.f32 1.442695, %v1054_v58  ;;  %v602_v58 = vmul.f32 %v522_v31, %v2594_v53 }
 0x1c5   :  { %v1022_v47 = vpop.permute.xlu1 %1021  ;;  %v288_v41 = vpop.permute.xlu0 %287  ;;  %1759 = vpow2.f32 %v1065_v60 }
 0x1c6   :  { %435 = vadd.xlane.f32.xlu0 %v423_v29  ;;  %1761 = vpow2.f32 %v397_v21  ;;  %v1039_v20 = vsel %vm69_vm0, %v990_v56, %v1022_v47 }
 0x1c7   :  { %409 = vadd.xlane.f32.xlu1 %v1746_v35  ;;  %v2987_v35 = vld [vmem:[#allocation38_spill] sm:$0xff]  ;;  %v1055_v56 = vsub.f32 %v1047_v38, %v1039_v20 }
 0x1c8   :  { %v521_v24 = vsel %vm69_vm0, %v2987_v35, %v2986_v37 }
 0x1c9   :  { %v320_v17 = vpop.permute.xlu1 %319  ;;  %v554_v13 = vpop.permute.xlu0 %553  ;;  %v601_v46 = vmul.f32 %v521_v24, %v2553_v30  ;;  %v1067_v2 = vmul.f32 1.442695, %v1055_v56  ;;  %v968_v24 = vsel %vm69_vm0, %v2412_v8, %v2433_v26 }
 0x1ca   :  { %659 = vadd.xlane.f32.xlu0 %v647_v34  ;;  %v1756_v57 = vpop.eup %1755  ;;  %v845_v34 = vmul.f32 1.442695, %v832_v9 }
 0x1cb   :  { %635 = vadd.xlane.f32.xlu1 %v1748_v33  ;;  %v609_v29 = vsub.f32 %v601_v46, %v593_v3  ;;  %v648_v62 = vsel %vm136_vm2, %v1756_v57, 0.0 }
 0x1cd   :  { %v586_v27 = vpop.permute.xlu1 %585  ;;  %v774_v43 = vpop.permute.xlu0 %773  ;;  %v623_v55 = vmul.f32 1.442695, %v609_v29 }
 0x1ce   :  { %881 = vadd.xlane.f32.xlu0 %v870_v52  ;;  %v1758_v59 = vpop.eup %1757  ;;  %v594_v39 = vsel %vm69_vm0, %v554_v13, %v586_v27  ;;  %v745_v52 = vsel %vm69_vm0, %v2385_v19, %v2400_v16 }
 0x1cf   :  { %857 = vadd.xlane.f32.xlu1 %v1750_v45  ;;  %1763 = vpow2.f32 %v623_v55  ;;  %v328_v45 = vsel %vm69_vm0, %v288_v41, %v320_v17  ;;  %v871_v23 = vsel %vm136_vm2, %v1758_v59, 0.0  ;;  %v1760_v32 = vpop.eup %1759  ;;  %v610_v4 = vsub.f32 %v602_v58, %v594_v39  ;;  %v2989_v39 = vld [vmem:[#allocation12_spill] sm:$0xff] }
 0x1d0   :  { %1765 = vpow2.f32 %v845_v34  ;;  %v384_v18 = vsub.f32 %v376_v51, %v328_v45  ;;  %v1094_v17 = vsel %vm136_vm2, %v1760_v32, 0.0  ;;  %v1762_v41 = vpop.eup %1761  ;;  %v825_v37 = vmul.f32 %v745_v52, %v2553_v30  ;;  %v61_v52 = vld [vmem:[#allocation7 + $0x8] sm:$0xff] }
 0x1d1   :  { %v806_v33 = vpop.permute.xlu1 %805  ;;  %v2596_v47 = vpop.permute.xlu0 %929  ;;  %1767 = vpow2.f32 %v1067_v2  ;;  %v425_v63 = vsel %vm136_vm2, %v1762_v41, 0.0  ;;  %v625_v19 = vmul.f32 1.442695, %v610_v4  ;;  %v2662_v58 = vsub.s32 %v2320_v1, %v2989_v39 }
 0x1d2   :  { %1103 = vadd.xlane.f32.xlu0 %v1093_v11  ;;  %v399_v49 = vmul.f32 1.442695, %v384_v18  ;;  %v1048_v11 = vmul.f32 %v968_v24, %v2506_v44  ;;  %v969_v44 = vsel %vm69_vm0, %v2514_v15, %v2522_v0  ;;  %v1333_v18 = vadd.s32 4294967264, %v2320_v1 }
 0x1d3   :  { %1079 = vadd.xlane.f32.xlu1 %v1752_v61  ;;  %v817_v61 = vsel %vm69_vm0, %v774_v43, %v806_v33  ;;  %v1049_v43 = vmul.f32 %v969_v44, %v2553_v30  ;;  %v66_v44 = vld [vmem:[#allocation7 + $0x30] sm:$0xff] }
 0x1d4   :  { %1769 = vpow2.f32 %v399_v49  ;;  %v833_v16 = vsub.f32 %v825_v37, %v817_v61  ;;  %v1382_v37 = vadd.s32 4294967256, %v2320_v1 }
 0x1d5   :  { %v2588_v6 = vpop.permute.xlu1 %961  ;;  %v994_v10 = vpop.permute.xlu0 %993  ;;  %1771 = vpow2.f32 %v625_v19 }
 0x1d6   :  { %437 = vadd.xlane.f32.xlu0 %v424_v54  ;;  %v847_v8 = vmul.f32 1.442695, %v833_v16  ;;  %v970_v7 = vsel %vm69_vm0, %v2596_v47, %v2588_v6 }
 0x1d7   :  { %411 = vadd.xlane.f32.xlu1 %v1754_v40  ;;  %v746_v40 = vsel %vm69_vm0, %v2480_v36, %v2494_v12 }
 0x1d8   :  { %v826_v33 = vmul.f32 %v746_v40, %v2594_v53  ;;  %1773 = vpow2.f32 %v847_v8  ;;  %v64_v8 = vld [vmem:[#allocation7 + $0x20] sm:$0xff] }
 0x1d9   :  { %v1026_v50 = vpop.permute.xlu1 %1025  ;;  %v1764_v27 = vpop.eup %1763 }
 0x1da   :  { %661 = vadd.xlane.f32.xlu0 %v648_v62  ;;  %v778_v60 = vpop.permute.xlu0 %777  ;;  %v1040_v22 = vsel %vm69_vm0, %v994_v10, %v1026_v50  ;;  %v649_v13 = vsel %vm136_vm2, %v1764_v27, 0.0  ;;  %v1766_v3 = vpop.eup %1765  ;;  %v60_v10 = vld [vmem:[#allocation7] sm:$0xff] }
 0x1db   :  { %637 = vadd.xlane.f32.xlu1 %v1756_v57  ;;  %v1056_v26 = vsub.f32 %v1048_v11, %v1040_v22  ;;  %v872_v21 = vsel %vm136_vm2, %v1766_v3, 0.0  ;;  %v1768_v29 = vpop.eup %1767  ;;  %v1697_v4 = vpack.c.bf16 %v61_v52, %v60_v10  ;;  %v62_v22 = vld [vmem:[#allocation7 + $0x10] sm:$0xff] }
 0x1dc   :  { %v1095_v57 = vsel %vm136_vm2, %v1768_v29, 0.0 }
 0x1dd   :  { %v810_v35 = vpop.permute.xlu1 %809  ;;  %v1069_v36 = vmul.f32 1.442695, %v1056_v26  ;;  %v65_v26 = vld [vmem:[#allocation7 + $0x28] sm:$0xff] }
 0x1de   :  { %883 = vadd.xlane.f32.xlu0 %v871_v23  ;;  %v818_v25 = vsel %vm69_vm0, %v778_v60, %v810_v35  ;;  %v998_v14 = vpop.permute.xlu0 %997  ;;  %v1770_v28 = vpop.eup %1769  ;;  %v1888_v35 = vmov 0.0|0.0   ;;  %v1186_v60 = vadd.s32 4294967288, %v2320_v1 }
 0x1df   :  { %859 = vadd.xlane.f32.xlu1 %v1758_v59  ;;  %v834_v12 = vsub.f32 %v826_v33, %v818_v25  ;;  %1775 = vpow2.f32 %v1069_v36  ;;  %v426_v20 = vsel %vm136_vm2, %v1770_v28, 0.0  ;;  %v1772_v62 = vpop.eup %1771  ;;  %v1050_v59 = vmul.f32 %v970_v7, %v2594_v53  ;;  %1696 = vmatprep.subr.bf16.mxu0 %v1888_v35  ;;  %v67_v36 = vld [vmem:[#allocation7 + $0x38] sm:$0xff] }
 0x1e0   :  { %v650_v6 = vsel %vm136_vm2, %v1772_v62, 0.0  ;;  %1698 = vmatpush3.bf16.msra.mxu0 %v1697_v4  ;;  %v2672_v25 = vsub.s32 %v1382_v37, %v2989_v39  ;;  %v1703_v33 = vpack.c.bf16 %v65_v26, %v64_v8  ;;  %v1706_v7 = vpack.c.bf16 %v67_v36, %v66_v44 }
 0x1e1   :  { %v1030_v46 = vpop.permute.xlu1 %1029  ;;  %v849_v15 = vmul.f32 1.442695, %v834_v12  ;;  %1699 = vmatprep.subr.bf16.mxu0 %v1888_v35  ;;  %v1480_v36 = vadd.s32 4294967240, %v2320_v1 }
 0x1e2   :  { %1105 = vadd.xlane.f32.xlu0 %v1094_v17  ;;  %v1041_v54 = vsel %vm69_vm0, %v998_v14, %v1030_v46  ;;  %v1002_v55 = vpop.permute.xlu0 %1001  ;;  %v1774_v42 = vpop.eup %1773  ;;  %v2658_v17 = vsub.s32 %v1333_v18, %v2989_v39  ;;  %v2676_v14 = vsub.s32 %v1186_v60, %v2989_v39 }
 0x1e3   :  { %1081 = vadd.xlane.f32.xlu1 %v1760_v32  ;;  %v1057_v0 = vsub.f32 %v1049_v43, %v1041_v54  ;;  %1777 = vpow2.f32 %v849_v15  ;;  %v873_v34 = vsel %vm136_vm2, %v1774_v42, 0.0 }
 0x1e5   :  { %v1034_v5 = vpop.permute.xlu1 %1033  ;;  %v1071_v30 = vmul.f32 1.442695, %v1057_v0 }
 0x1e6   :  { %439 = vadd.xlane.f32.xlu0 %v425_v63  ;;  %v1042_v9 = vsel %vm69_vm0, %v1002_v55, %v1034_v5 }
 0x1e7   :  { %413 = vadd.xlane.f32.xlu1 %v1762_v41  ;;  %v1058_v38 = vsub.f32 %v1050_v59, %v1042_v9  ;;  %1779 = vpow2.f32 %v1071_v30 }
 0x1e9   :  { %v1073_v48 = vmul.f32 1.442695, %v1058_v38  ;;  %v1776_v56 = vpop.eup %1775 }
 0x1ea   :  { %663 = vadd.xlane.f32.xlu0 %v649_v13  ;;  %v1096_v53 = vsel %vm136_vm2, %v1776_v56, 0.0  ;;  %v63_v13 = vld [vmem:[#allocation7 + $0x18] sm:$0xff] }
 0x1eb   :  { %639 = vadd.xlane.f32.xlu1 %v1764_v27  ;;  %1781 = vpow2.f32 %v1073_v48  ;;  %v1700_v40 = vpack.c.bf16 %v63_v13, %v62_v22 }
 0x1ed   :  { %v1778_v47 = vpop.eup %1777  ;;  %1701 = vmatpush3.bf16.msra.mxu0 %v1700_v40 }
 0x1ee   :  { %885 = vadd.xlane.f32.xlu0 %v872_v21  ;;  %v874_v45 = vsel %vm136_vm2, %v1778_v47, 0.0  ;;  %v1890_v21 = vmov 0.0   ;;  %1702 = vmatprep.subr.bf16.mxu0 %v1888_v35 }
 0x1ef   :  { %861 = vadd.xlane.f32.xlu1 %v1766_v3  ;;  %1693 = vmatprep.mubr.msk.f32.mxu0 %vm1889_vm4, %v1890_v21 }
 0x1f1   :  { %v1780_v23 = vpop.eup %1779  ;;  %1704 = vmatpush3.bf16.msra.mxu0 %v1703_v33 }
 0x1f2   :  { %1107 = vadd.xlane.f32.xlu0 %v1095_v57  ;;  %v1097_v32 = vsel %vm136_vm2, %v1780_v23, 0.0  ;;  %1705 = vmatprep.subr.bf16.mxu0 %v1888_v35 }
 0x1f3   :  { %1083 = vadd.xlane.f32.xlu1 %v1768_v29 }
 0x1f5   :  { %v1782_v51 = vpop.eup %1781  ;;  %1707 = vmatpush3.bf16.msra.mxu0 %v1706_v7 }
 0x1f6   :  { %441 = vadd.xlane.f32.xlu0 %v426_v20  ;;  %v1098_v31 = vsel %vm136_vm2, %v1782_v51, 0.0  ;;  %vm1533_vm2 = vcmask 457728  }
 0x1f7   :  { %415 = vadd.xlane.f32.xlu1 %v1770_v28 }
 0x1fa   :  { %665 = vadd.xlane.f32.xlu0 %v650_v6 }
 0x1fb   :  { %641 = vadd.xlane.f32.xlu1 %v1772_v62 }
 0x1fe   :  { %887 = vadd.xlane.f32.xlu0 %v873_v34 }
 0x1ff   :  { %863 = vadd.xlane.f32.xlu1 %v1774_v42 }
 0x202   :  { %1109 = vadd.xlane.f32.xlu0 %v1096_v53 }
 0x203   :  { %1085 = vadd.xlane.f32.xlu1 %v1776_v56  ;;  %v1431_v56 = vadd.s32 4294967248, %v2320_v1 }
 0x206   :  { %889 = vadd.xlane.f32.xlu0 %v874_v45 }
 0x207   :  { %865 = vadd.xlane.f32.xlu1 %v1778_v47 }
 0x20a   :  { %1111 = vadd.xlane.f32.xlu0 %v1097_v32 }
 0x20b   :  { %1087 = vadd.xlane.f32.xlu1 %v1780_v23  ;;  %v1235_v23 = vadd.s32 4294967280, %v2320_v1 }
 0x20e   :  { %1113 = vadd.xlane.f32.xlu0 %v1098_v31 }
 0x20f   :  { %1089 = vadd.xlane.f32.xlu1 %v1782_v51 }
 0x21b   :  { %v402_v2 = vpop.xlane.xlu0 %401 }
 0x21f   :  { %v428_v50 = vpop.xlane.xlu0 %427 }
 0x220   :  { %v443_v41 = vsub.f32 %v402_v2, %v428_v50  ;;  %v1337_v61 = vrot.slane %v428_v50, %v2658_v17  ;;  %v2694_v2 = vsub.s32 %v1431_v56, %v2989_v39  ;;  %v2698_v50 = vsub.s32 %v1235_v23, %v2989_v39 }
 0x222   :  { %v1134_v19 = vrot.slane %v443_v41, %v2662_v58 }
 0x223   :  { %v430_v49 = vpop.xlane.xlu0 %429 }
 0x224   :  { %v1341_v63 = vrot.slane %v430_v49, %v2658_v17  ;;  %v404_v27 = vpop.xlane.xlu1 %403 }
 0x225   :  { %v444_v24 = vsub.f32 %v404_v27, %v430_v49 }
 0x226   :  { %v1366_v16 = vsel %vm1163_vm3, %v1341_v63, %v1337_v61 }
 0x227   :  { %v1138_v3 = vrot.slane %v444_v24, %v2662_v58  ;;  %v630_v11 = vpop.xlane.xlu0 %629 }
 0x228   :  { %v628_v46 = vpop.xlane.xlu1 %627 }
 0x229   :  { %v1164_v29 = vsel %vm1163_vm3, %v1138_v3, %v1134_v19 }
 0x22b   :  { %v654_v12 = vpop.xlane.xlu0 %653 }
 0x22c   :  { %v668_v54 = vsub.f32 %v630_v11, %v654_v12  ;;  %v1390_v57 = vrot.slane %v654_v12, %v2672_v25  ;;  %v652_v28 = vpop.xlane.xlu1 %651 }
 0x22d   :  { %v667_v43 = vsub.f32 %v628_v46, %v652_v28  ;;  %v1386_v5 = vrot.slane %v652_v28, %v2672_v25  ;;  %v1284_v28 = vadd.s32 4294967272, %v2320_v1 }
 0x22e   :  { %v1194_v15 = vrot.slane %v668_v54, %v2676_v14 }
 0x22f   :  { %v1190_v0 = vrot.slane %v667_v43, %v2676_v14  ;;  %v1415_v55 = vsel %vm1163_vm3, %v1390_v57, %v1386_v5  ;;  %v432_v9 = vpop.xlane.xlu0 %431 }
 0x230   :  { %v1345_v20 = vrot.slane %v432_v9, %v2658_v17  ;;  %v406_v62 = vpop.xlane.xlu1 %405 }
 0x231   :  { %v1219_v59 = vsel %vm1163_vm3, %v1194_v15, %v1190_v0  ;;  %v445_v30 = vsub.f32 %v406_v62, %v432_v9  ;;  %v2722_v15 = vsub.s32 %v1480_v36, %v2989_v39 }
 0x232   :  { %v1367_v38 = vsel %vm1165_vm5, %v1345_v20, %v1366_v16 }
 0x233   :  { %v1142_v6 = vrot.slane %v445_v30, %v2662_v58  ;;  %v656_v42 = vpop.xlane.xlu0 %655 }
 0x234   :  { %v1394_v48 = vrot.slane %v656_v42, %v2672_v25  ;;  %v632_v34 = vpop.xlane.xlu1 %631 }
 0x235   :  { %v1166_v53 = vsel %vm1165_vm5, %v1142_v6, %v1164_v29  ;;  %v669_v47 = vsub.f32 %v632_v34, %v656_v42 }
 0x236   :  { %v1416_v45 = vsel %vm1165_vm5, %v1394_v48, %v1415_v55  ;;  %v2728_v55 = vsub.s32 %v1284_v28, %v2989_v39 }
 0x237   :  { %v1198_v32 = vrot.slane %v669_v47, %v2676_v14  ;;  %v854_v51 = vpop.xlane.xlu0 %853 }
 0x238   :  { %v852_v31 = vpop.xlane.xlu1 %851 }
 0x239   :  { %v1220_v18 = vsel %vm1165_vm5, %v1198_v32, %v1219_v59 }
 0x23b   :  { %v878_v41 = vpop.xlane.xlu0 %877 }
 0x23c   :  { %v892_v10 = vsub.f32 %v854_v51, %v878_v41  ;;  %v1439_v52 = vrot.slane %v878_v41, %v2694_v2  ;;  %v876_v49 = vpop.xlane.xlu1 %875 }
 0x23d   :  { %v891_v4 = vsub.f32 %v852_v31, %v876_v49  ;;  %v1435_v61 = vrot.slane %v876_v49, %v2694_v2 }
 0x23e   :  { %v1243_v63 = vrot.slane %v892_v10, %v2698_v50 }
 0x23f   :  { %v1239_v27 = vrot.slane %v891_v4, %v2698_v50  ;;  %v1464_v37 = vsel %vm1163_vm3, %v1439_v52, %v1435_v61  ;;  %v434_v35 = vpop.xlane.xlu0 %433 }
 0x240   :  { %v1349_v24 = vrot.slane %v434_v35, %v2658_v17  ;;  %v408_v19 = vpop.xlane.xlu1 %407 }
 0x241   :  { %v1268_v16 = vsel %vm1163_vm3, %v1243_v63, %v1239_v27  ;;  %v446_v60 = vsub.f32 %v408_v19, %v434_v35 }
 0x242   :  { %v1368_v22 = vsel %vm1167_vm6, %v1349_v24, %v1367_v38 }
 0x243   :  { %v1146_v13 = vrot.slane %v446_v60, %v2662_v58  ;;  %v658_v3 = vpop.xlane.xlu0 %657 }
 0x244   :  { %v1398_v11 = vrot.slane %v658_v3, %v2672_v25  ;;  %v634_v40 = vpop.xlane.xlu1 %633 }
 0x245   :  { %v1168_v8 = vsel %vm1167_vm6, %v1146_v13, %v1166_v53  ;;  %v670_v26 = vsub.f32 %v634_v40, %v658_v3 }
 0x246   :  { %v1417_v46 = vsel %vm1167_vm6, %v1398_v11, %v1416_v45 }
 0x247   :  { %v1202_v21 = vrot.slane %v670_v26, %v2676_v14  ;;  %v880_v29 = vpop.xlane.xlu0 %879 }
 0x248   :  { %v1443_v33 = vrot.slane %v880_v29, %v2694_v2  ;;  %v856_v44 = vpop.xlane.xlu1 %855 }
 0x249   :  { %v2716_v12 = vsel %vm1167_vm6, %v1202_v21, %v1220_v18  ;;  %v893_v54 = vsub.f32 %v856_v44, %v880_v29 }
 0x24a   :  { %v1465_v57 = vsel %vm1165_vm5, %v1443_v33, %v1464_v37 }
 0x24b   :  { %v1247_v43 = vrot.slane %v893_v54, %v2698_v50  ;;  %v1078_v5 = vpop.xlane.xlu0 %1077 }
 0x24c   :  { %v1076_v7 = vpop.xlane.xlu1 %1075 }
 0x24d   :  { %v2725_v0 = vsel %vm1165_vm5, %v1247_v43, %v1268_v16 }
 0x24f   :  { %v1102_v9 = vpop.xlane.xlu0 %1101 }
 0x250   :  { %v1116_v20 = vsub.f32 %v1078_v5, %v1102_v9  ;;  %v1488_v62 = vrot.slane %v1102_v9, %v2722_v15  ;;  %v1100_v59 = vpop.xlane.xlu1 %1099 }
 0x251   :  { %v1115_v30 = vsub.f32 %v1076_v7, %v1100_v59  ;;  %v1484_v1 = vrot.slane %v1100_v59, %v2722_v15 }
 0x252   :  { %v1292_v38 = vrot.slane %v1116_v20, %v2728_v55 }
 0x253   :  { %v1288_v6 = vrot.slane %v1115_v30, %v2728_v55  ;;  %v2735_v42 = vsel %vm1163_vm3, %v1488_v62, %v1484_v1  ;;  %v436_v48 = vpop.xlane.xlu0 %435 }
 0x254   :  { %v1353_v39 = vrot.slane %v436_v48, %v2658_v17  ;;  %v410_v34 = vpop.xlane.xlu1 %409 }
 0x255   :  { %v2739_v56 = vsel %vm1163_vm3, %v1292_v38, %v1288_v6  ;;  %v447_v53 = vsub.f32 %v410_v34, %v436_v48 }
 0x256   :  { %v2742_v47 = vsel %vm1169_vm7, %v1353_v39, %v1368_v22 }
 0x257   :  { %v1150_v45 = vrot.slane %v447_v53, %v2662_v58  ;;  %v660_v23 = vpop.xlane.xlu0 %659 }
 0x258   :  { %v1402_v32 = vrot.slane %v660_v23, %v2672_v25  ;;  %v636_v51 = vpop.xlane.xlu1 %635 }
 0x259   :  { %v1170_v31 = vsel %vm1169_vm7, %v1150_v45, %v1168_v8  ;;  %v671_v21 = vsub.f32 %v636_v51, %v660_v23 }
 0x25a   :  { %v2748_v18 = vsel %vm1169_vm7, %v1402_v32, %v1417_v46 }
 0x25b   :  { %v882_v41 = vpop.xlane.xlu0 %881  ;;  %v1206_v43 = vrot.slane %v671_v21, %v2676_v14 }
 0x25c   :  { %v1447_v10 = vrot.slane %v882_v41, %v2694_v2  ;;  %v858_v52 = vpop.xlane.xlu1 %857 }
 0x25d   :  { %v1222_v38 = vsel %vm1169_vm7, %v1206_v43, %v2716_v12  ;;  %v894_v23 = vsub.f32 %v858_v52, %v882_v41 }
 0x25e   :  { %v2752_v49 = vsel %vm1167_vm6, %v1447_v10, %v1465_v57 }
 0x25f   :  { %v2754_v4 = vpop.xlane.xlu0 %1103 }
 0x260   :  { %v2756_v61 = vpop.xlane.xlu1 %1079 }
 0x263   :  { %v2758_v63 = vpop.xlane.xlu0 %437 }
 0x264   :  { %v412_v27 = vpop.xlane.xlu1 %411 }
 0x265   :  { %v448_v29 = vsub.f32 %v412_v27, %v2758_v63 }
 0x267   :  { %v2760_v37 = vpop.xlane.xlu0 %661  ;;  %v1154_v5 = vrot.slane %v448_v29, %v2662_v58 }
 0x268   :  { %v638_v35 = vpop.xlane.xlu1 %637 }
 0x269   :  { %v672_v33 = vsub.f32 %v638_v35, %v2760_v37  ;;  %v1172_v6 = vsel %vm1171_vm8, %v1154_v5, %v1170_v31 }
 0x26b   :  { %v2762_v24 = vpop.xlane.xlu0 %883  ;;  %v1210_v7 = vrot.slane %v672_v33, %v2676_v14  ;;  %v1492_v33 = vrot.slane %v2754_v4, %v2722_v15 }
 0x26c   :  { %v860_v19 = vpop.xlane.xlu1 %859 }
 0x26d   :  { %v1223_v48 = vsel %vm1171_vm8, %v1210_v7, %v1222_v38  ;;  %v895_v51 = vsub.f32 %v860_v19, %v2762_v24 }
 0x26f   :  { %v2764_v16 = vpop.xlane.xlu0 %1105  ;;  %v1255_v41 = vrot.slane %v895_v51, %v2698_v50 }
 0x270   :  { %v2766_v60 = vpop.xlane.xlu1 %1081 }
 0x273   :  { %v2768_v22 = vpop.xlane.xlu0 %439 }
 0x274   :  { %v414_v13 = vpop.xlane.xlu1 %413 }
 0x275   :  { %v449_v36 = vsub.f32 %v414_v13, %v2768_v22  ;;  %v1251_v13 = vrot.slane %v894_v23, %v2698_v50 }
 0x277   :  { %v2770_v3 = vpop.xlane.xlu0 %663  ;;  %v1158_v20 = vrot.slane %v449_v36, %v2662_v58  ;;  %v1270_v29 = vsel %vm1167_vm6, %v1251_v13, %v2725_v0  ;;  %v1118_v36 = vsub.f32 %v2766_v60, %v2764_v16  ;;  %v1406_v0 = vrot.slane %v2760_v37, %v2672_v25 }
 0x278   :  { %v640_v11 = vpop.xlane.xlu1 %639 }
 0x279   :  { %v673_v54 = vsub.f32 %v640_v11, %v2770_v3  ;;  %v1174_v53 = vsel %vm1173_vm9, %v1158_v20, %v1172_v6  ;;  %v1117_v11 = vsub.f32 %v2756_v61, %v2754_v4  ;;  %v1451_v20 = vrot.slane %v2762_v24, %v2694_v2 }
 0x27a   :  { %v1419_v6 = vsel %vm1171_vm8, %v1406_v0, %v2748_v18  ;;  %v1410_v18 = vrot.slane %v2770_v3, %v2672_v25 }
 0x27b   :  { %v2772_v40 = vpop.xlane.xlu0 %885  ;;  %v1214_v62 = vrot.slane %v673_v54, %v2676_v14  ;;  %v1296_v54 = vrot.slane %v1117_v11, %v2728_v55 }
 0x27c   :  { %v862_v8 = vpop.xlane.xlu1 %861  ;;  %v1455_v23 = vrot.slane %v2772_v40, %v2694_v2 }
 0x27d   :  { %v896_v10 = vsub.f32 %v862_v8, %v2772_v40  ;;  %v1318_v24 = vsel %vm1165_vm5, %v1296_v54, %v2739_v56 }
 0x27f   :  { %v2774_v26 = vpop.xlane.xlu0 %1107  ;;  %v1259_v52 = vrot.slane %v896_v10, %v2698_v50 }
 0x280   :  { %v2776_v46 = vpop.xlane.xlu1 %1083 }
 0x281   :  { %v1119_v43 = vsub.f32 %v2776_v46, %v2774_v26  ;;  %v1300_v46 = vrot.slane %v1118_v36, %v2728_v55 }
 0x283   :  { %v2780_v44 = vpop.xlane.xlu0 %441 }
 0x284   :  { %v416_v57 = vpop.xlane.xlu1 %415 }
 0x285   :  { %v450_v28 = vsub.f32 %v416_v57, %v2780_v44  ;;  %v1357_v57 = vrot.slane %v2758_v63, %v2658_v17 }
 0x287   :  { %v2788_v9 = vpop.xlane.xlu0 %665  ;;  %v1162_v30 = vrot.slane %v450_v28, %v2662_v58  ;;  %v1224_v58 = vsel %vm1173_vm9, %v1214_v62, %v1223_v48  ;;  %v1271_v28 = vsel %vm1169_vm7, %v1255_v41, %v1270_v29  ;;  %v1370_v38 = vsel %vm1171_vm8, %v1357_v57, %v2742_v47 }
 0x288   :  { %v642_v59 = vpop.xlane.xlu1 %641  ;;  %v1272_v4 = vsel %vm1171_vm8, %v1259_v52, %v1271_v28  ;;  %v1319_v47 = vsel %vm1167_vm6, %v1300_v46, %v1318_v24 }
 0x289   :  { %v674_v1 = vsub.f32 %v642_v59, %v2788_v9  ;;  %v1176_v12 = vsel %vm1175_vm11, %v1162_v30, %v1174_v53  ;;  %v1514_v30 = vsel %vm1165_vm5, %v1492_v33, %v2735_v42  ;;  %v1467_v42 = vsel %vm1169_vm7, %v1451_v20, %v2752_v49 }
 0x28a   :  { %v1496_v53 = vrot.slane %v2764_v16, %v2722_v15  ;;  %v1500_v49 = vrot.slane %v2774_v26, %v2722_v15 }
 0x28b   :  { %v1218_v39 = vrot.slane %v674_v1, %v2676_v14  ;;  %v2799_v34 = vpop.xlane.xlu0 %887 }
 0x28c   :  { %v864_v45 = vpop.xlane.xlu1 %863  ;;  %v1459_v51 = vrot.slane %v2799_v34, %v2694_v2  ;;  %v1515_v26 = vsel %vm1167_vm6, %v1496_v53, %v1514_v30 }
 0x28d   :  { %v1225_v32 = vsel %vm1175_vm11, %v1218_v39, %v1224_v58  ;;  %v897_v14 = vsub.f32 %v864_v45, %v2799_v34  ;;  %v1361_v58 = vrot.slane %v2768_v22, %v2658_v17  ;;  %v1365_v22 = vrot.slane %v2780_v44, %v2658_v17 }
 0x28e   :  { %v1522_v31 = vsel %vm1521_vm10, %v1176_v12, %v1225_v32  ;;  %v1414_v32 = vrot.slane %v2788_v9, %v2672_v25  ;;  %v1420_v9 = vsel %vm1173_vm9, %v1410_v18, %v1419_v6 }
 0x28f   :  { %v2807_v27 = vpop.xlane.xlu0 %1109  ;;  %v1263_v19 = vrot.slane %v897_v14, %v2698_v50  ;;  %v1371_v25 = vsel %vm1173_vm9, %v1361_v58, %v1370_v38  ;;  %v1468_v14 = vsel %vm1171_vm8, %v1455_v23, %v1467_v42  ;;  %v1667_v42 = vld [vmem:[%s2926_s4] ss:$0 sm:$0xff] }
 0x290   :  { %v1086_v35 = vpop.xlane.xlu1 %1085  ;;  %v1504_v3 = vrot.slane %v2807_v27, %v2722_v15  ;;  %v1421_v13 = vsel %vm1175_vm11, %v1414_v32, %v1420_v9  ;;  %v1469_v11 = vsel %vm1173_vm9, %v1459_v51, %v1468_v14 }
 0x291   :  { %v1120_v5 = vsub.f32 %v1086_v35, %v2807_v27  ;;  %v1273_v63 = vsel %vm1173_vm9, %v1263_v19, %v1272_v4  ;;  %v1372_v35 = vsel %vm1175_vm11, %v1365_v22, %v1371_v25 }
 0x293   :  { %v2815_v21 = vpop.xlane.xlu0 %889  ;;  %v1308_v48 = vrot.slane %v1120_v5, %v2728_v55 }
 0x294   :  { %v866_v8 = vpop.xlane.xlu1 %865  ;;  %v1463_v10 = vrot.slane %v2815_v21, %v2694_v2 }
 0x295   :  { %v898_v61 = vsub.f32 %v866_v8, %v2815_v21 }
 0x297   :  { %v1267_v60 = vrot.slane %v898_v61, %v2698_v50  ;;  %v1112_v7 = vpop.xlane.xlu0 %1111  ;;  %v1304_v50 = vrot.slane %v1119_v43, %v2728_v55 }
 0x298   :  { %v1088_v62 = vpop.xlane.xlu1 %1087  ;;  %v1508_v17 = vrot.slane %v1112_v7, %v2722_v15 }
 0x299   :  { %v1274_v59 = vsel %vm1175_vm11, %v1267_v60, %v1273_v63  ;;  %v1121_v37 = vsub.f32 %v1088_v62, %v1112_v7  ;;  %v1320_v16 = vsel %vm1169_vm7, %v1304_v50, %v1319_v47 }
 0x29a   :  { %v1524_v1 = vsel %vm1523_vm12, %v1522_v31, %v1274_v59  ;;  %v1321_v40 = vsel %vm1171_vm8, %v1308_v48, %v1320_v16  ;;  %v1666_v48 = vld [vmem:[%s2925_s3] ss:$0 sm:$0xff] }
 0x29b   :  { %v1114_v39 = vpop.xlane.xlu0 %1113  ;;  %v1312_v56 = vrot.slane %v1121_v37, %v2728_v55 }
 0x29c   :  { %v1090_v45 = vpop.xlane.xlu1 %1089  ;;  %v1512_v34 = vrot.slane %v1114_v39, %v2722_v15  ;;  %v1470_v15 = vsel %vm1175_vm11, %v1463_v10, %v1469_v11 }
 0x29d   :  { %v1122_v12 = vsub.f32 %v1090_v45, %v1114_v39  ;;  %v1322_v44 = vsel %vm1173_vm9, %v1312_v56, %v1321_v40 }
 0x29f   :  { %v1316_v31 = vrot.slane %v1122_v12, %v2728_v55  ;;  %v1516_v55 = vsel %vm1169_vm7, %v1500_v49, %v1515_v26 }
 0x2a0   :  { %v1517_v41 = vsel %vm1171_vm8, %v1504_v3, %v1516_v55 }
 0x2a1   :  { %v1323_v27 = vsel %vm1175_vm11, %v1316_v31, %v1322_v44  ;;  %v1518_v21 = vsel %vm1173_vm9, %v1508_v17, %v1517_v41 }
 0x2a2   :  { %v1526_v2 = vsel %vm1525_vm13, %v1524_v1, %v1323_v27  ;;  %v1519_v8 = vsel %vm1175_vm11, %v1512_v34, %v1518_v21 }
 0x2a3   :  { %v1528_v52 = vsel %vm1527_vm14, %v1526_v2, %v1372_v35 }
 0x2a4   :  { %v1530_v19 = vsel %vm1529_vm15, %v1528_v52, %v1421_v13 }
 0x2a5   :  { %v1532_v29 = vsel %vm1531_vm1, %v1530_v19, %v1470_v15 }
 0x2a6   :  { %v1534_v33 = vsel %vm1533_vm2, %v1532_v29, %v1519_v8 }
 0x2a7   :  { %1783 = vrcp.f32 %v1534_v33 }
 0x2b1   :  { %v1784_v36 = vpop.eup %1783 }
 0x2b2   :  { %1694 = vmatmul.mubr.msk.f32.vlgmr.msra.gmra.mrb[0].mxu0 %vm69_vm0, %v1784_v36 }
 0x385   :  { %v1605_v61 = vpop.f32.mrb[0].mxu0 }
 0x386   :  { %v1609_v54 = vsel %vm69_vm0, %v1605_v61, 0.0  ;;  %v1695_v57 = vpop.f32.mrb[1].mxu0 }
 0x387   :  { %v1610_v28 = vrot.slane %v1609_v54, 4 }
 0x389   :  { %v1611_v43 = vadd.f32 %v1610_v28, %v1609_v54 }
 0x38b   :  { %v1612_v0 = vrot.slane %v1611_v43, 2 }
 0x38d   :  { %v1613_v4 = vadd.f32 %v1612_v0, %v1611_v43 }
 0x38f   :  { %v1614_v5 = vrot.slane %v1613_v4, 1 }
 0x391   :  { %v1615_v60 = vadd.f32 %v1614_v5, %v1613_v4 }
 0x393   :  { %v1617_v7 = vmul.f32 0.125, %v1615_v60 }
 0x395   :  { %v1618_v20 = vsub.f32 %v1605_v61, %v1617_v7 }
 0x397   :  { %v1619_v63 = vmul.f32 %v1618_v20, %v1618_v20 }
 0x399   :  { %v1620_v62 = vsel %vm69_vm0, %v1619_v63, 0.0 }
 0x39a   :  { %v1621_v46 = vrot.slane %v1620_v62, 4 }
 0x39c   :  { %v1622_v59 = vadd.f32 %v1621_v46, %v1620_v62 }
 0x39e   :  { %v1623_v37 = vrot.slane %v1622_v59, 2 }
 0x3a0   :  { %v1624_v30 = vadd.f32 %v1623_v37, %v1622_v59 }
 0x3a2   :  { %v1625_v50 = vrot.slane %v1624_v30, 1 }
 0x3a4   :  { %v1626_v1 = vadd.f32 %v1625_v50, %v1624_v30 }
 0x3a6   :  { %v1627_v24 = vmul.f32 0.125, %v1626_v1 }
 0x3a8   :  { %v1628_v38 = vadd.f32 1e-05, %v1627_v24 }
 0x3aa   :  { %1785 = vrsqrt.f32 %v1628_v38 }
 0x3b4   :  { %v1786_v6 = vpop.eup %1785 }
 0x3b5   :  { %v1630_v39 = vmul.f32 %v1786_v6, %v1618_v20 }
 0x3b7   :  { %v1638_v53 = vmul.f32 %v1666_v48, %v1630_v39 }
 0x3b9   :  { %v1646_v58 = vadd.f32 %v1667_v42, %v1638_v53 }
 0x3bb   :  { %v1647_v56 = vmax.f32 %v1646_v58, 0.0 }
 0x3bd   :  { %1648 = vst.msk [vmem:[#allocation8] sm:$0xff] %vm69_vm0, %v1647_v56 }
 0x3be   :  { %1864 = shalt.err (!%p1861_p0)
}
 0x3bf   :  { %s1865_s12 = scalar_lea.hbm %s2927_s5, 128 }
 0x3c0   :  { %p1866_p1 = scmp.ne.s32.totalorder %s2927_s5, %s1865_s12  ;;  %p1869_p2 = scmp.lt.u32.totalorder %s1865_s12, %s2927_s5 }
 0x3c2   :  { %p1871_p3 = pnand %p1869_p2, %p1866_p1 }
 0x3c4   :  { %1874 = shalt.err (!%p1871_p3)
}
 0x3c5   :  { %1658 = dma.vmem_to_hbm [thread:$0]  %s1656_s9, 128, %s2927_s5, [#allocation4]  }
 0x3c6   :  { %1879 = dma.done.wait [#allocation4], 128  }
 0x3c7   :  { %1880 = vsyncadd [#allocation4], 4294967168 }
 0x3c8   :  { %1662 = vsyncpa [#allocation3], 1 }
 0x3c9   :  { %1663 = vsyncpa [#allocation6], 1 }
 0x3ca   :  { %1664 = vsyncpa [#allocation4], 1 }

</bundles_post_ra>
